<compile_context>
chip_gen: v6e
topology: v6e:2x2x1
jax: 0.10.0
libtpu: 0.0.40
codegen_flags: <defaults>
</compile_context>

<pallas_src>
import jax
import jax.numpy as jnp
from jax.experimental import pallas as pl
from jax.experimental.pallas import tpu as pltpu

NUM_FEA = 128
NUM_FEA_4 = NUM_FEA * 2 * 2 * 2          # 1024
C_IN = NUM_FEA_4 * 2                     # 2048
C_MID = 512
C_FC1 = 128
C_OUT = 1


def _relnet_kernel(x_ref, w1_ref, shift_ref, w2_ref, b2_ref, w3_ref, b3_ref,
                   o_ref):
    # 1x1 conv over a 1x1 spatial map == dense matmul.
    # Cast x to bf16 in-kernel (no-op if the caller already passed bf16);
    # w1 already carries the folded BN scale.  bf16 MXU, f32 accumulation.
    x = x_ref[...].astype(jnp.bfloat16)
    h = jnp.dot(x, w1_ref[...], preferred_element_type=jnp.float32)
    # Fused conv-bias + BatchNorm2d (eval) shift, then ReLU (f32 epilogue).
    h = jnp.maximum(h + shift_ref[...], 0.0)

    # fc1 + ReLU: bf16 MXU pass with f32 accumulation, bias + ReLU in f32.
    h = jnp.dot(h.astype(jnp.bfloat16), w2_ref[...],
                preferred_element_type=jnp.float32) + b2_ref[...]
    h = jnp.maximum(h, 0.0)

    # dropout == identity in eval mode

    # fc2 has output width 1: VPU multiply + XLU lane reduction instead of a
    # (TB,128)@(128,1) MXU pass.  Bias is an SMEM scalar.
    logit = jnp.sum(h * w3_ref[...], axis=-1, keepdims=True) + b3_ref[0, 0]
    o_ref[...] = jax.nn.sigmoid(logit).astype(o_ref.dtype)


def _round_up(n, m):
    return ((n + m - 1) // m) * m


def _choose_tb(B):
    """Batch tile: multiple of 8 (16 when padding anyway), <=512 rows,
    >=2 grid steps whenever the batch allows, last block mostly full."""
    if B <= 16:
        return _round_up(max(B, 1), 8)
    n_blocks = max(2, pl.cdiv(B, 512))
    return min(512, _round_up(pl.cdiv(B, n_blocks), 16))


def prepare_params(params):
    """One-time weight prep: fold conv bias + eval-mode BN, cast to bf16.

    Call once (outside the hot loop); the result is what
    relation_network_forward consumes, so no per-call cast/fold passes remain.
    """
    eps = 1e-5
    inv_std = 1.0 / jnp.sqrt(params["bn_var"].astype(jnp.float32) + eps)
    scale = params["bn_gamma"].astype(jnp.float32) * inv_std            # (512,)
    shift = params["bn_beta"].astype(jnp.float32) + scale * (
        params["conv_b"].astype(jnp.float32) - params["bn_mean"].astype(jnp.float32))

    # Fold the BN scale into the conv weight columns BEFORE the bf16 cast
    # (better numerics, one fewer VPU mul + one fewer resident operand).
    w1 = (params["conv_w"].astype(jnp.float32) * scale[None, :]).astype(jnp.bfloat16)

    return {
        "w1": w1,                                                       # (2048, 512) bf16
        "shift": shift.reshape(1, C_MID).astype(jnp.float32),           # (1, 512)   f32
        "w2": params["fc1_w"].astype(jnp.bfloat16),                     # (512, 128) bf16
        "b2": params["fc1_b"].reshape(1, C_FC1).astype(jnp.float32),    # (1, 128)   f32
        "w3": params["fc2_w"].reshape(1, C_FC1).astype(jnp.float32),    # (1, 128)   f32
        "b3": params["fc2_b"].reshape(1, 1).astype(jnp.float32),        # (1, 1)     SMEM
    }


def relation_network_forward(x_nchw, prep):
    """x_nchw: (B, 2048, 1, 1) float32 (or bf16), prep = prepare_params(...).

    Returns (B, 1) float32 sigmoid outputs.
    """
    B = x_nchw.shape[0]
    assert x_nchw.shape[1:] == (C_IN, 1, 1), x_nchw.shape
    x2d = x_nchw.reshape(B, C_IN)   # kept in its native dtype; cast in-kernel

    TB = _choose_tb(B)
    Bp = _round_up(B, TB)
    if Bp != B:
        x2d = jnp.pad(x2d, ((0, Bp - B), (0, 0)))
    n_blocks = Bp // TB

    def resident(shape):
        # Constant block index -> stays VMEM-resident across grid steps.
        return pl.BlockSpec(shape, lambda i: (0,) * len(shape))

    x_bytes = x2d.dtype.itemsize
    flops = 2 * Bp * (C_IN * C_MID + C_MID * C_FC1 + C_FC1 * C_OUT)
    bytes_accessed = (
        Bp * C_IN * x_bytes                 # x (native dtype, cast in-kernel)
        + C_IN * C_MID * 2                  # w1 (bf16, BN-scaled)
        + C_MID * C_FC1 * 2                 # w2 (bf16)
        + (C_MID + C_FC1 + C_FC1 + 1) * 4   # shift/b2/w3/b3
        + Bp * C_OUT * 4                    # output
    )

    out = pl.pallas_call(
        _relnet_kernel,
        out_shape=jax.ShapeDtypeStruct((Bp, C_OUT), jnp.float32),
        grid=(n_blocks,),
        in_specs=[
            pl.BlockSpec((TB, C_IN), lambda i: (i, 0)),            # x tile
            resident((C_IN, C_MID)),                                # w1 (bf16)
            resident((1, C_MID)),                                   # shift
            resident((C_MID, C_FC1)),                               # w2 (bf16)
            resident((1, C_FC1)),                                   # b2
            resident((1, C_FC1)),                                   # w3 row
            pl.BlockSpec(memory_space=pltpu.MemorySpace.SMEM),      # b3 scalar
        ],
        out_specs=pl.BlockSpec((TB, C_OUT), lambda i: (i, 0)),
        compiler_params=pltpu.CompilerParams(
            dimension_semantics=("parallel",),
            vmem_limit_bytes=24 * 1024 * 1024,
        ),
        cost_estimate=pl.CostEstimate(
            flops=flops, transcendentals=Bp, bytes_accessed=bytes_accessed),
    )(x2d, prep["w1"], prep["shift"], prep["w2"], prep["b2"],
      prep["w3"], prep["b3"])

    return out[:B]


def init_params(key):
    ks = jax.random.split(key, 8)

    def u(k, shape, fan_in):
        bound = 1.0 / jnp.sqrt(fan_in)
        return jax.random.uniform(k, shape, jnp.float32, -bound, bound)

    return {
        # Conv2d(2048, 512, 1): weight (512, 2048, 1, 1) stored transposed as (2048, 512)
        "conv_w": u(ks[0], (C_IN, C_MID), C_IN),
        "conv_b": u(ks[1], (C_MID,), C_IN),
        # BatchNorm2d(512) (eval-mode running stats)
        "bn_gamma": jnp.ones((C_MID,), jnp.float32),
        "bn_beta": jnp.zeros((C_MID,), jnp.float32),
        "bn_mean": jnp.zeros((C_MID,), jnp.float32),
        "bn_var": jnp.ones((C_MID,), jnp.float32),
        # Linear(512, 128): weight stored transposed as (512, 128)
        "fc1_w": u(ks[2], (C_MID, C_FC1), C_MID),
        "fc1_b": u(ks[3], (C_FC1,), C_MID),
        # Linear(128, 1): weight stored transposed as (128, 1)
        "fc2_w": u(ks[4], (C_FC1, C_OUT), C_FC1),
        "fc2_b": u(ks[5], (C_OUT,), C_FC1),
    }


if __name__ == "__main__":
    key = jax.random.PRNGKey(0)
    k_x, k_p = jax.random.split(key)
    B = 8
    x = jax.random.normal(k_x, (B, C_IN, 1, 1), jnp.float32)   # NCHW
    params = init_params(k_p)
    prep = prepare_params(params)                               # one-time weight prep

    out = relation_network_forward(x, prep)
    out = jax.block_until_ready(out)
    assert out.shape == (B, 1), out.shape
    assert bool(jnp.all((out >= 0.0) & (out <= 1.0)))
    print("KERNEL_OK")
</pallas_src>

<mosaic_0001>
module attributes {stable_mosaic.version = 11 : i64} {
  func.func @_relnet_kernel(%arg0: i32, %arg1: memref<8x2048xf32, #tpu.memory_space<vmem>>, %arg2: memref<2048x512xbf16, #tpu.memory_space<vmem>>, %arg3: memref<1x512xf32, #tpu.memory_space<vmem>>, %arg4: memref<512x128xbf16, #tpu.memory_space<vmem>>, %arg5: memref<1x128xf32, #tpu.memory_space<vmem>>, %arg6: memref<1x128xf32, #tpu.memory_space<vmem>>, %arg7: memref<1x1xf32, #tpu.memory_space<smem>>, %arg8: memref<8x1xf32, #tpu.memory_space<vmem>>) attributes {dimension_semantics = [#tpu.dimension_semantics<parallel>], iteration_bounds = array<i64: 1>, scalar_prefetch = 0 : i64, scratch_operands = 0 : i64, tpu.core_type = #tpu.core_type<tc>, window_params = [{transform_indices = @transform_0, window_bounds = array<i64: 8, 2048>}, {pipeline_mode = #tpu.pipeline_mode<synchronous>, transform_indices = @transform_1, window_bounds = array<i64: 2048, 512>}, {pipeline_mode = #tpu.pipeline_mode<synchronous>, transform_indices = @transform_2, window_bounds = array<i64: 1, 512>}, {pipeline_mode = #tpu.pipeline_mode<synchronous>, transform_indices = @transform_3, window_bounds = array<i64: 512, 128>}, {pipeline_mode = #tpu.pipeline_mode<synchronous>, transform_indices = @transform_4, window_bounds = array<i64: 1, 128>}, {pipeline_mode = #tpu.pipeline_mode<synchronous>, transform_indices = @transform_5, window_bounds = array<i64: 1, 128>}, {transform_indices = @transform_6, window_bounds = array<i64: 1, 1>}, {transform_indices = @transform_7, window_bounds = array<i64: 8, 1>}]} {
    %c0 = arith.constant 0 : index
    %c0_0 = arith.constant 0 : index
    %0 = vector.load %arg1[%c0, %c0_0] : memref<8x2048xf32, #tpu.memory_space<vmem>>, vector<8x2048xf32>
    %1 = arith.truncf %0 : vector<8x2048xf32> to vector<8x2048xbf16>
    %c0_1 = arith.constant 0 : index
    %c0_2 = arith.constant 0 : index
    %2 = vector.load %arg2[%c0_1, %c0_2] : memref<2048x512xbf16, #tpu.memory_space<vmem>>, vector<2048x512xbf16>
    %cst = arith.constant dense<0.000000e+00> : vector<8x512xf32>
    %3 = tpu.matmul %1, %2, %cst {dimension_numbers = #tpu.dot_dimension_numbers<[1], [0], [0], [1], [0, 0, 1, 1], [], []>} : vector<8x2048xbf16>, vector<2048x512xbf16>, vector<8x512xf32> -> vector<8x512xf32>
    %c0_3 = arith.constant 0 : index
    %c0_4 = arith.constant 0 : index
    %4 = vector.load %arg3[%c0_3, %c0_4] : memref<1x512xf32, #tpu.memory_space<vmem>>, vector<1x512xf32>
    %5 = vector.broadcast %4 : vector<1x512xf32> to vector<8x512xf32>
    %6 = arith.addf %3, %5 : vector<8x512xf32>
    %cst_5 = arith.constant 0.000000e+00 : f32
    %7 = vector.broadcast %cst_5 : f32 to vector<8x512xf32>
    %8 = arith.maximumf %6, %7 : vector<8x512xf32>
    %9 = arith.truncf %8 : vector<8x512xf32> to vector<8x512xbf16>
    %c0_6 = arith.constant 0 : index
    %c0_7 = arith.constant 0 : index
    %10 = vector.load %arg4[%c0_6, %c0_7] : memref<512x128xbf16, #tpu.memory_space<vmem>>, vector<512x128xbf16>
    %cst_8 = arith.constant dense<0.000000e+00> : vector<8x128xf32>
    %11 = tpu.matmul %9, %10, %cst_8 {dimension_numbers = #tpu.dot_dimension_numbers<[1], [0], [0], [1], [0, 0, 1, 1], [], []>} : vector<8x512xbf16>, vector<512x128xbf16>, vector<8x128xf32> -> vector<8x128xf32>
    %c0_9 = arith.constant 0 : index
    %c0_10 = arith.constant 0 : index
    %12 = vector.load %arg5[%c0_9, %c0_10] : memref<1x128xf32, #tpu.memory_space<vmem>>, vector<1x128xf32>
    %13 = vector.broadcast %12 : vector<1x128xf32> to vector<8x128xf32>
    %14 = arith.addf %11, %13 : vector<8x128xf32>
    %cst_11 = arith.constant 0.000000e+00 : f32
    %15 = vector.broadcast %cst_11 : f32 to vector<8x128xf32>
    %16 = arith.maximumf %14, %15 : vector<8x128xf32>
    %c0_12 = arith.constant 0 : index
    %c0_13 = arith.constant 0 : index
    %17 = vector.load %arg6[%c0_12, %c0_13] : memref<1x128xf32, #tpu.memory_space<vmem>>, vector<1x128xf32>
    %18 = vector.broadcast %17 : vector<1x128xf32> to vector<8x128xf32>
    %19 = arith.mulf %16, %18 : vector<8x128xf32>
    %cst_14 = arith.constant dense<0.000000e+00> : vector<8xf32>
    %20 = vector.multi_reduction <add>, %19, %cst_14 [1] : vector<8x128xf32> to vector<8xf32>
    %21 = vector.shape_cast %20 : vector<8xf32> to vector<8x1xf32>
    %c0_15 = arith.constant 0 : index
    %c0_16 = arith.constant 0 : index
    %22 = memref.load %arg7[%c0_15, %c0_16] : memref<1x1xf32, #tpu.memory_space<smem>>
    %23 = vector.broadcast %22 : f32 to vector<8x1xf32>
    %24 = arith.addf %21, %23 : vector<8x1xf32>
    %25 = arith.negf %24 : vector<8x1xf32>
    %26 = math.exp %25 : vector<8x1xf32>
    %cst_17 = arith.constant 1.000000e+00 : f32
    %27 = vector.broadcast %cst_17 : f32 to vector<8x1xf32>
    %28 = arith.addf %27, %26 : vector<8x1xf32>
    %29 = arith.divf %27, %28 : vector<8x1xf32>
    %c0_18 = arith.constant 0 : index
    %c0_19 = arith.constant 0 : index
    %30 = vector.load %arg8[%c0_18, %c0_19] : memref<8x1xf32, #tpu.memory_space<vmem>>, vector<8x1xf32>
    tpu.vector_store %arg8[%c0_18, %c0_19], %29 {strides = array<i32>} : memref<8x1xf32, #tpu.memory_space<vmem>>, vector<8x1xf32>,
    return
  }
  func.func @transform_0(%arg0: i32) -> (i32, i32) {
    %c0_i32 = arith.constant 0 : i32
    %c0_i32_0 = arith.constant 0 : i32
    return %arg0, %c0_i32 : i32, i32
  }
  func.func @transform_1(%arg0: i32) -> (i32, i32) {
    %c0_i32 = arith.constant 0 : i32
    %c0_i32_0 = arith.constant 0 : i32
    %c0_i32_1 = arith.constant 0 : i32
    return %c0_i32, %c0_i32_0 : i32, i32
  }
  func.func @transform_2(%arg0: i32) -> (i32, i32) {
    %c0_i32 = arith.constant 0 : i32
    %c0_i32_0 = arith.constant 0 : i32
    %c0_i32_1 = arith.constant 0 : i32
    return %c0_i32, %c0_i32_0 : i32, i32
  }
  func.func @transform_3(%arg0: i32) -> (i32, i32) {
    %c0_i32 = arith.constant 0 : i32
    %c0_i32_0 = arith.constant 0 : i32
    %c0_i32_1 = arith.constant 0 : i32
    return %c0_i32, %c0_i32_0 : i32, i32
  }
  func.func @transform_4(%arg0: i32) -> (i32, i32) {
    %c0_i32 = arith.constant 0 : i32
    %c0_i32_0 = arith.constant 0 : i32
    %c0_i32_1 = arith.constant 0 : i32
    return %c0_i32, %c0_i32_0 : i32, i32
  }
  func.func @transform_5(%arg0: i32) -> (i32, i32) {
    %c0_i32 = arith.constant 0 : i32
    %c0_i32_0 = arith.constant 0 : i32
    %c0_i32_1 = arith.constant 0 : i32
    return %c0_i32, %c0_i32_0 : i32, i32
  }
  func.func @transform_6(%arg0: i32) -> (i32, i32) {
    %c0_i32 = arith.constant 0 : i32
    %c0_i32_0 = arith.constant 0 : i32
    %c0_i32_1 = arith.constant 0 : i32
    return %c0_i32, %c0_i32_0 : i32, i32
  }
  func.func @transform_7(%arg0: i32) -> (i32, i32) {
    %c0_i32 = arith.constant 0 : i32
    %c0_i32_0 = arith.constant 0 : i32
    return %arg0, %c0_i32 : i32, i32
  }
}

</mosaic_0001>

<bundles_post_ra>
// kernel: tpu_custom_call.1
= control target key start
LH: loop header
LB: loop body
LE: loop exit
PB: predicated region body
PF: predicated region fallthrough
CT: control target
= control target key end

     0   :  { %13 = vsyncpa [#allocation4], 0  ;;  %s5970_s0 = inlined_call_operand.hbm [shape: f32[8,2048], index: 0, kind: input, shape index: {}]   ;;  %s5971_s1 = inlined_call_operand.hbm [shape: bf16[2048,512], index: 1, kind: input, shape index: {}]   ;;  %s5972_s2 = inlined_call_operand.hbm [shape: f32[1,512], index: 2, kind: input, shape index: {}]   ;;  %s5973_s3 = inlined_call_operand.hbm [shape: bf16[512,128], index: 3, kind: input, shape index: {}]   ;;  %s5974_s4 = inlined_call_operand.hbm [shape: f32[1,128], index: 4, kind: input, shape index: {}]   ;;  %s5975_s5 = inlined_call_operand.hbm [shape: f32[1,128], index: 5, kind: input, shape index: {}]   ;;  %s5976_s6 = inlined_call_operand.<no memory space> [shape: f32[1,1], index: 6, kind: input, shape index: {}]   ;;  %s5977_s7 = inlined_call_operand.vmem [shape: f32[8,1], index: 7, kind: output, shape index: {}]  }
   0x1   :  { %14 = vsyncpa [#allocation6], 0 }
   0x2   :  { %15 = vsyncpa [#allocation9], 0 }
   0x3   :  { %16 = vsyncpa [#allocation12], 0  ;;  %s5799_s24 = smov [#allocation5]  }
   0x4   :  { %s32_s25 = sshll.u32 %s5799_s24, 4  ;;  %s33_s25 = int_to_ptr.vmem [resolvable:$true] %s32_s25 }
   0x5   :  { %s5679_s26 = scalar_lea.vmem %s33_s25, 65536  ;;  %p5684_p1 = scmp.lt.s32.totalorder %s33_s25, %s33_s25 }
   0x6   :  { %p5680_p0 = scmp.ne.s32.totalorder %s33_s25, %s5679_s26  ;;  %p5685_p2 = scmp.lt.s32.totalorder %s5679_s26, %s5679_s26 }
   0x8   :  { %p5686_p3 = por %p5685_p2, %p5684_p1 }
   0xa   :  { %p5687_p4 = pnand %p5686_p3, %p5680_p0 }
   0xc   :  { %5690 = shalt.err (!%p5687_p4)
}
   0xd   :  { %s5800_s27 = smov 256   ;;  %s5801_s28 = smov 16  }
   0xe   :  { %38 = dma.hbm_to_vmem [thread:$0]  %s5971_s1, 65536, %s33_s25, [#allocation6], %s5800_s27, %s5800_s27, %s5801_s28  }
   0xf   :  { %s5802_s8 = smov [#allocation8]  }
  0x10   :  { %s54_s9 = sshll.u32 %s5802_s8, 4  ;;  %s55_s9 = int_to_ptr.vmem [resolvable:$true] %s54_s9 }
  0x11   :  { %s5699_s10 = scalar_lea.vmem %s55_s9, 4096  ;;  %p5704_p6 = scmp.lt.s32.totalorder %s55_s9, %s55_s9 }
  0x12   :  { %p5700_p5 = scmp.ne.s32.totalorder %s55_s9, %s5699_s10  ;;  %p5705_p7 = scmp.lt.s32.totalorder %s5699_s10, %s5699_s10 }
  0x14   :  { %p5706_p8 = por %p5705_p7, %p5704_p6 }
  0x16   :  { %p5707_p9 = pnand %p5706_p8, %p5700_p5 }
  0x18   :  { %5710 = shalt.err (!%p5707_p9)
}
  0x19   :  { %s5803_s11 = smov 64   ;;  %s5804_s12 = smov 4  }
  0x1a   :  { %60 = dma.hbm_to_vmem [thread:$0]  %s5973_s3, 4096, %s55_s9, [#allocation9], %s5803_s11, %s5803_s11, %s5804_s12  }
  0x1b   :  { %s5805_s15 = smov [#allocation3]   ;;  %s5806_s17 = smov [#allocation7]  }
  0x1c   :  { %s23_s16 = sshll.u32 %s5805_s15, 4  ;;  %s45_s1 = sshll.u32 %s5806_s17, 4  ;;  %s24_s16 = int_to_ptr.vmem [resolvable:$true] %s23_s16  ;;  %s46_s1 = int_to_ptr.vmem [resolvable:$true] %s45_s1 }
  0x1d   :  { %s5719_s18 = scalar_lea.vmem %s24_s16, 2048  ;;  %p5724_p11 = scmp.lt.s32.totalorder %s24_s16, %s24_s16 }
  0x1e   :  { %p5720_p10 = scmp.ne.s32.totalorder %s24_s16, %s5719_s18  ;;  %p5725_p12 = scmp.lt.s32.totalorder %s5719_s18, %s5719_s18 }
  0x20   :  { %p5726_p13 = por %p5725_p12, %p5724_p11 }
  0x22   :  { %p5727_p0 = pnand %p5726_p13, %p5720_p10 }
  0x24   :  { %5730 = shalt.err (!%p5727_p0)
}
  0x25   :  { %26 = dma.hbm_to_vmem [thread:$0]  %s5970_s0, 2048, %s24_s16, [#allocation4]  }
  0x26   :  { %s5739_s21 = scalar_lea.vmem %s46_s1, 64  ;;  %p5744_p2 = scmp.lt.s32.totalorder %s46_s1, %s46_s1 }
  0x27   :  { %p5740_p1 = scmp.ne.s32.totalorder %s46_s1, %s5739_s21  ;;  %p5745_p3 = scmp.lt.s32.totalorder %s5739_s21, %s5739_s21 }
  0x29   :  { %p5746_p4 = por %p5745_p3, %p5744_p2 }
  0x2b   :  { %p5747_p5 = pnand %p5746_p4, %p5740_p1 }
  0x2d   :  { %5750 = shalt.err (!%p5747_p5)
}
  0x2e   :  { %48 = dma.hbm_to_vmem [thread:$0]  %s5972_s2, 64, %s46_s1, [#allocation6]  }
  0x2f   :  { %s5807_s23 = smov [#allocation10]   ;;  %s5808_s25 = smov [#allocation11]  }
  0x30   :  { %s67_s24 = sshll.u32 %s5807_s23, 4  ;;  %s77_s26 = sshll.u32 %s5808_s25, 4  ;;  %s68_s24 = int_to_ptr.vmem [resolvable:$true] %s67_s24  ;;  %s78_s26 = int_to_ptr.vmem [resolvable:$true] %s77_s26 }
  0x31   :  { %s5759_s27 = scalar_lea.vmem %s68_s24, 16  ;;  %s5763_s0 = scalar_lea.vmem %s68_s24, 32 }
  0x32   :  { %p5760_p6 = scmp.ne.s32.totalorder %s68_s24, %s5759_s27  ;;  %p5764_p7 = scmp.lt.s32.totalorder %s68_s24, %s68_s24 }
  0x33   :  { %p5765_p8 = scmp.lt.s32.totalorder %s5763_s0, %s5759_s27 }
  0x35   :  { %p5766_p9 = por %p5765_p8, %p5764_p7 }
  0x37   :  { %p5767_p10 = pnand %p5766_p9, %p5760_p6 }
  0x39   :  { %5770 = shalt.err (!%p5767_p10)
}
  0x3a   :  { %70 = dma.hbm_to_vmem [thread:$0]  %s5974_s4, 16, %s68_s24, [#allocation9]  }
  0x3b   :  { %s5779_s30 = scalar_lea.vmem %s78_s26, 16  ;;  %s5783_s2 = scalar_lea.vmem %s78_s26, 32 }
  0x3c   :  { %p5780_p11 = scmp.ne.s32.totalorder %s78_s26, %s5779_s30  ;;  %p5784_p12 = scmp.lt.s32.totalorder %s78_s26, %s78_s26 }
  0x3d   :  { %p5785_p13 = scmp.lt.s32.totalorder %s5783_s2, %s5779_s30 }
  0x3f   :  { %p5786_p0 = por %p5785_p13, %p5784_p12 }
  0x41   :  { %p5787_p1 = pnand %p5786_p0, %p5780_p11 }
  0x43   :  { %5790 = shalt.err (!%p5787_p1)
}
  0x44   :  { %80 = dma.hbm_to_vmem [thread:$0]  %s5975_s5, 16, %s78_s26, [#allocation12]  }
  0x45   :  { %5791 = dma.done.wait [#allocation4], 2048  }
  0x46   :  { %5792 = vsyncadd [#allocation4], 4294965248 }
  0x47   :  { %5793 = dma.done.wait [#allocation6], 65600  }
  0x48   :  { %5794 = vsyncadd [#allocation6], 4294901696 }
  0x49   :  { %5795 = dma.done.wait [#allocation9], 4112  }
  0x4a   :  { %5796 = vsyncadd [#allocation9], 4294963184 }
  0x4b   :  { %5797 = dma.done.wait [#allocation12], 16  }
  0x4c   :  { %5798 = vsyncadd [#allocation12], 4294967280  ;;  %v4866_v0 = vld [vmem:[#allocation5 + $0xe4] ss:$16 sps:$4 sm:$0xff]   ;;  %v4870_v2 = vld [vmem:[#allocation5 + $0xe0] ss:$16 sps:$4 sm:$0xff]  }
  0x4d   :  { %v4868_v1 = vld [vmem:[#allocation5 + $0x2e4] ss:$16 sps:$4 sm:$0xff]   ;;  %3228 = vmatprep.subr.bf16.mxu0 %v4866_v0  ;;  %v4871_v3 = vld [vmem:[#allocation5 + $0x2e0] ss:$16 sps:$4 sm:$0xff]   ;;  %v103_v46 = vld [vmem:[#allocation3 + $0x8] sm:$0xff]  ;;  %vm4255_vm0 = vcmask 7168  }
  0x4e   :  { %3269 = vmatprep.subr.bf16.mxu1 %v4868_v1  ;;  %v4872_v4 = vld [vmem:[#allocation5 + $0xc4] ss:$16 sps:$4 sm:$0xff]   ;;  %3229 = vmatpush1.bf16.msra.mxu0 %v4870_v2  ;;  %v4876_v6 = vld [vmem:[#allocation5 + $0xc0] ss:$16 sps:$4 sm:$0xff]   ;;  %v5867_v49 = vpack.c.bf16 %v103_v46, %v103_v46  ;;  %v105_v50 = vld [vmem:[#allocation3 + $0x18] sm:$0xff] }
  0x4f   :  { %3270 = vmatpush1.bf16.msra.mxu1 %v4871_v3  ;;  %v4874_v5 = vld [vmem:[#allocation5 + $0x2c4] ss:$16 sps:$4 sm:$0xff]   ;;  %3230 = vmatprep.subr.bf16.mxu0 %v4872_v4  ;;  %v4877_v7 = vld [vmem:[#allocation5 + $0x2c0] ss:$16 sps:$4 sm:$0xff]   ;;  %v5869_v52 = vpack.c.bf16 %v105_v50, %v105_v50 }
  0x50   :  { %3271 = vmatprep.subr.bf16.mxu1 %v4874_v5  ;;  %v4878_v8 = vld [vmem:[#allocation5 + $0xa4] ss:$16 sps:$4 sm:$0xff]   ;;  %v4882_v10 = vld [vmem:[#allocation5 + $0xa0] ss:$16 sps:$4 sm:$0xff]   ;;  %3260 = vmatprep.mubr.bf16.mxu0 %v5867_v49 }
  0x51   :  { %v4880_v9 = vld [vmem:[#allocation5 + $0x2a4] ss:$16 sps:$4 sm:$0xff]   ;;  %v4883_v11 = vld [vmem:[#allocation5 + $0x2a0] ss:$16 sps:$4 sm:$0xff]   ;;  %3301 = vmatprep.mubr.bf16.mxu1 %v5869_v52 }
  0x52   :  { %3231 = vmatpush1.bf16.msra.mxu0 %v4876_v6  ;;  %v4884_v12 = vld [vmem:[#allocation5 + $0x84] ss:$16 sps:$4 sm:$0xff]   ;;  %v4888_v14 = vld [vmem:[#allocation5 + $0x80] ss:$16 sps:$4 sm:$0xff]  }
  0x53   :  { %3272 = vmatpush1.bf16.msra.mxu1 %v4877_v7  ;;  %3232 = vmatprep.subr.bf16.mxu0 %v4878_v8  ;;  %v4886_v13 = vld [vmem:[#allocation5 + $0x284] ss:$16 sps:$4 sm:$0xff]   ;;  %v4889_v15 = vld [vmem:[#allocation5 + $0x280] ss:$16 sps:$4 sm:$0xff]  }
  0x54   :  { %3273 = vmatprep.subr.bf16.mxu1 %v4880_v9  ;;  %v4890_v16 = vld [vmem:[#allocation5 + $0x64] ss:$16 sps:$4 sm:$0xff]   ;;  %v4894_v18 = vld [vmem:[#allocation5 + $0x60] ss:$16 sps:$4 sm:$0xff]  }
  0x55   :  { %v4892_v17 = vld [vmem:[#allocation5 + $0x264] ss:$16 sps:$4 sm:$0xff]   ;;  %v4895_v19 = vld [vmem:[#allocation5 + $0x260] ss:$16 sps:$4 sm:$0xff]  }
  0x56   :  { %3233 = vmatpush1.bf16.msra.mxu0 %v4882_v10  ;;  %v4896_v20 = vld [vmem:[#allocation5 + $0x44] ss:$16 sps:$4 sm:$0xff]   ;;  %v4900_v22 = vld [vmem:[#allocation5 + $0x40] ss:$16 sps:$4 sm:$0xff]  }
  0x57   :  { %3274 = vmatpush1.bf16.msra.mxu1 %v4883_v11  ;;  %3234 = vmatprep.subr.bf16.mxu0 %v4884_v12  ;;  %v4898_v21 = vld [vmem:[#allocation5 + $0x244] ss:$16 sps:$4 sm:$0xff]   ;;  %v4901_v23 = vld [vmem:[#allocation5 + $0x240] ss:$16 sps:$4 sm:$0xff]  }
  0x58   :  { %3275 = vmatprep.subr.bf16.mxu1 %v4886_v13  ;;  %v4902_v24 = vld [vmem:[#allocation5 + $0x24] ss:$16 sps:$4 sm:$0xff]   ;;  %v4906_v26 = vld [vmem:[#allocation5 + $0x20] ss:$16 sps:$4 sm:$0xff]  }
  0x59   :  { %v4904_v25 = vld [vmem:[#allocation5 + $0x224] ss:$16 sps:$4 sm:$0xff]   ;;  %v4907_v27 = vld [vmem:[#allocation5 + $0x220] ss:$16 sps:$4 sm:$0xff]  }
  0x5a   :  { %3235 = vmatpush1.bf16.msra.mxu0 %v4888_v14  ;;  %v4908_v28 = vld [vmem:[#allocation5 + $0x4] ss:$16 sps:$4 sm:$0xff]   ;;  %v4912_v30 = vld [vmem:[#allocation5] ss:$16 sps:$4 sm:$0xff]  }
  0x5b   :  { %3276 = vmatpush1.bf16.msra.mxu1 %v4889_v15  ;;  %3236 = vmatprep.subr.bf16.mxu0 %v4890_v16  ;;  %v4910_v29 = vld [vmem:[#allocation5 + $0x204] ss:$16 sps:$4 sm:$0xff]   ;;  %v4913_v31 = vld [vmem:[#allocation5 + $0x200] ss:$16 sps:$4 sm:$0xff]  }
  0x5c   :  { %3277 = vmatprep.subr.bf16.mxu1 %v4892_v17  ;;  %v4914_v32 = vld [vmem:[#allocation5 + $0x1e4] ss:$16 sps:$4 sm:$0xff]   ;;  %v4918_v34 = vld [vmem:[#allocation5 + $0x1e0] ss:$16 sps:$4 sm:$0xff]  }
  0x5d   :  { %v4916_v33 = vld [vmem:[#allocation5 + $0x3e4] ss:$16 sps:$4 sm:$0xff]   ;;  %v4919_v35 = vld [vmem:[#allocation5 + $0x3e0] ss:$16 sps:$4 sm:$0xff]  }
  0x5e   :  { %3237 = vmatpush1.bf16.msra.mxu0 %v4894_v18  ;;  %v4920_v36 = vld [vmem:[#allocation5 + $0x1c4] ss:$16 sps:$4 sm:$0xff]   ;;  %v4924_v38 = vld [vmem:[#allocation5 + $0x1c0] ss:$16 sps:$4 sm:$0xff]  }
  0x5f   :  { %3278 = vmatpush1.bf16.msra.mxu1 %v4895_v19  ;;  %3238 = vmatprep.subr.bf16.mxu0 %v4896_v20  ;;  %v4922_v37 = vld [vmem:[#allocation5 + $0x3c4] ss:$16 sps:$4 sm:$0xff]   ;;  %v4925_v39 = vld [vmem:[#allocation5 + $0x3c0] ss:$16 sps:$4 sm:$0xff]  }
  0x60   :  { %3279 = vmatprep.subr.bf16.mxu1 %v4898_v21  ;;  %v4926_v40 = vld [vmem:[#allocation5 + $0x1a4] ss:$16 sps:$4 sm:$0xff]   ;;  %v4930_v42 = vld [vmem:[#allocation5 + $0x1a0] ss:$16 sps:$4 sm:$0xff]  }
  0x61   :  { %v4928_v41 = vld [vmem:[#allocation5 + $0x3a4] ss:$16 sps:$4 sm:$0xff]   ;;  %v4931_v43 = vld [vmem:[#allocation5 + $0x3a0] ss:$16 sps:$4 sm:$0xff]  }
  0x62   :  { %3239 = vmatpush1.bf16.msra.mxu0 %v4900_v22  ;;  %v4932_v44 = vld [vmem:[#allocation5 + $0x184] ss:$16 sps:$4 sm:$0xff]   ;;  %v4936_v47 = vld [vmem:[#allocation5 + $0x180] ss:$16 sps:$4 sm:$0xff]  }
  0x63   :  { %3280 = vmatpush1.bf16.msra.mxu1 %v4901_v23  ;;  %3240 = vmatprep.subr.bf16.mxu0 %v4902_v24  ;;  %v4934_v45 = vld [vmem:[#allocation5 + $0x384] ss:$16 sps:$4 sm:$0xff]   ;;  %v4937_v48 = vld [vmem:[#allocation5 + $0x380] ss:$16 sps:$4 sm:$0xff]  }
  0x64   :  { %3281 = vmatprep.subr.bf16.mxu1 %v4904_v25  ;;  %v4938_v51 = vld [vmem:[#allocation5 + $0x164] ss:$16 sps:$4 sm:$0xff]   ;;  %v4942_v54 = vld [vmem:[#allocation5 + $0x160] ss:$16 sps:$4 sm:$0xff]  }
  0x65   :  { %v4940_v53 = vld [vmem:[#allocation5 + $0x364] ss:$16 sps:$4 sm:$0xff]   ;;  %v4943_v55 = vld [vmem:[#allocation5 + $0x360] ss:$16 sps:$4 sm:$0xff]  }
  0x66   :  { %3241 = vmatpush1.bf16.msra.mxu0 %v4906_v26  ;;  %v4944_v56 = vld [vmem:[#allocation5 + $0x144] ss:$16 sps:$4 sm:$0xff]   ;;  %v4948_v58 = vld [vmem:[#allocation5 + $0x140] ss:$16 sps:$4 sm:$0xff]  }
  0x67   :  { %3282 = vmatpush1.bf16.msra.mxu1 %v4907_v27  ;;  %3242 = vmatprep.subr.bf16.mxu0 %v4908_v28  ;;  %v4946_v57 = vld [vmem:[#allocation5 + $0x344] ss:$16 sps:$4 sm:$0xff]   ;;  %v4949_v59 = vld [vmem:[#allocation5 + $0x340] ss:$16 sps:$4 sm:$0xff]  }
  0x68   :  { %3283 = vmatprep.subr.bf16.mxu1 %v4910_v29  ;;  %v4950_v60 = vld [vmem:[#allocation5 + $0x124] ss:$16 sps:$4 sm:$0xff]   ;;  %v4954_v62 = vld [vmem:[#allocation5 + $0x120] ss:$16 sps:$4 sm:$0xff]  }
  0x69   :  { %v4952_v61 = vld [vmem:[#allocation5 + $0x324] ss:$16 sps:$4 sm:$0xff]   ;;  %v4955_v63 = vld [vmem:[#allocation5 + $0x320] ss:$16 sps:$4 sm:$0xff]  }
  0x6a   :  { %3243 = vmatpush1.bf16.msra.mxu0 %v4912_v30  ;;  %v4956_v0 = vld [vmem:[#allocation5 + $0x104] ss:$16 sps:$4 sm:$0xff]   ;;  %v4960_v2 = vld [vmem:[#allocation5 + $0x100] ss:$16 sps:$4 sm:$0xff]  }
  0x6b   :  { %3284 = vmatpush1.bf16.msra.mxu1 %v4913_v31  ;;  %3244 = vmatprep.subr.bf16.mxu0 %v4914_v32  ;;  %v4958_v1 = vld [vmem:[#allocation5 + $0x304] ss:$16 sps:$4 sm:$0xff]   ;;  %v4961_v3 = vld [vmem:[#allocation5 + $0x300] ss:$16 sps:$4 sm:$0xff]  }
  0x6c   :  { %3285 = vmatprep.subr.bf16.mxu1 %v4916_v33  ;;  %v102_v4 = vld [vmem:[#allocation3] sm:$0xff]  ;;  %v104_v5 = vld [vmem:[#allocation3 + $0x10] sm:$0xff] }
  0x6d   :  { %v4964_v6 = vld [vmem:[#allocation5 + $0x4e4] ss:$16 sps:$4 sm:$0xff]   ;;  %v5873_v8 = vpack.c.bf16 %v102_v4, %v102_v4  ;;  %v5875_v9 = vpack.c.bf16 %v104_v5, %v104_v5  ;;  %v4962_v10 = vld [vmem:[#allocation5 + $0x4e0] ss:$16 sps:$4 sm:$0xff]  }
  0x6e   :  { %3245 = vmatpush2.bf16.msra.mxu0 %v4918_v34  ;;  %v4967_v7 = vld [vmem:[#allocation5 + $0x6e4] ss:$16 sps:$4 sm:$0xff]   ;;  %v4965_v11 = vld [vmem:[#allocation5 + $0x6e0] ss:$16 sps:$4 sm:$0xff]   ;;  %v107_v34 = vld [vmem:[#allocation3 + $0x28] sm:$0xff] }
  0x6f   :  { %3286 = vmatpush2.bf16.msra.mxu1 %v4919_v35  ;;  %3246 = vmatprep.subr.bf16.mxu0 %v4920_v36  ;;  %v4970_v12 = vld [vmem:[#allocation5 + $0x4c4] ss:$16 sps:$4 sm:$0xff]   ;;  %v4968_v14 = vld [vmem:[#allocation5 + $0x4c0] ss:$16 sps:$4 sm:$0xff]  }
  0x70   :  { %3287 = vmatprep.subr.bf16.mxu1 %v4922_v37  ;;  %v4973_v13 = vld [vmem:[#allocation5 + $0x6c4] ss:$16 sps:$4 sm:$0xff]   ;;  %v4971_v15 = vld [vmem:[#allocation5 + $0x6c0] ss:$16 sps:$4 sm:$0xff]   ;;  %v5879_v37 = vpack.c.bf16 %v107_v34, %v107_v34 }
  0x71   :  { %v4976_v16 = vld [vmem:[#allocation5 + $0x4a4] ss:$16 sps:$4 sm:$0xff]   ;;  %v4974_v18 = vld [vmem:[#allocation5 + $0x4a0] ss:$16 sps:$4 sm:$0xff]  }
  0x72   :  { %3247 = vmatpush2.bf16.msra.mxu0 %v4924_v38  ;;  %v4979_v17 = vld [vmem:[#allocation5 + $0x6a4] ss:$16 sps:$4 sm:$0xff]   ;;  %v4977_v19 = vld [vmem:[#allocation5 + $0x6a0] ss:$16 sps:$4 sm:$0xff]   ;;  %v109_v38 = vld [vmem:[#allocation3 + $0x38] sm:$0xff] }
  0x73   :  { %3288 = vmatpush2.bf16.msra.mxu1 %v4925_v39  ;;  %3248 = vmatprep.subr.bf16.mxu0 %v4926_v40  ;;  %v4982_v20 = vld [vmem:[#allocation5 + $0x484] ss:$16 sps:$4 sm:$0xff]   ;;  %v4980_v22 = vld [vmem:[#allocation5 + $0x480] ss:$16 sps:$4 sm:$0xff]   ;;  %v5881_v40 = vpack.c.bf16 %v109_v38, %v109_v38 }
  0x74   :  { %3289 = vmatprep.subr.bf16.mxu1 %v4928_v41  ;;  %v4985_v21 = vld [vmem:[#allocation5 + $0x684] ss:$16 sps:$4 sm:$0xff]   ;;  %v4983_v23 = vld [vmem:[#allocation5 + $0x680] ss:$16 sps:$4 sm:$0xff]  }
  0x75   :  { %v4988_v24 = vld [vmem:[#allocation5 + $0x464] ss:$16 sps:$4 sm:$0xff]   ;;  %v4986_v26 = vld [vmem:[#allocation5 + $0x460] ss:$16 sps:$4 sm:$0xff]  }
  0x76   :  { %3249 = vmatpush2.bf16.msra.mxu0 %v4930_v42  ;;  %v4991_v25 = vld [vmem:[#allocation5 + $0x664] ss:$16 sps:$4 sm:$0xff]   ;;  %v4989_v27 = vld [vmem:[#allocation5 + $0x660] ss:$16 sps:$4 sm:$0xff]  }
  0x77   :  { %3290 = vmatpush2.bf16.msra.mxu1 %v4931_v43  ;;  %3250 = vmatprep.subr.bf16.mxu0 %v4932_v44  ;;  %v4994_v28 = vld [vmem:[#allocation5 + $0x444] ss:$16 sps:$4 sm:$0xff]   ;;  %v4992_v30 = vld [vmem:[#allocation5 + $0x440] ss:$16 sps:$4 sm:$0xff]  }
  0x78   :  { %3291 = vmatprep.subr.bf16.mxu1 %v4934_v45  ;;  %v4997_v29 = vld [vmem:[#allocation5 + $0x644] ss:$16 sps:$4 sm:$0xff]   ;;  %v4995_v31 = vld [vmem:[#allocation5 + $0x640] ss:$16 sps:$4 sm:$0xff]  }
  0x79   :  { %v5000_v32 = vld [vmem:[#allocation5 + $0x424] ss:$16 sps:$4 sm:$0xff]   ;;  %v4998_v35 = vld [vmem:[#allocation5 + $0x420] ss:$16 sps:$4 sm:$0xff]  }
  0x7a   :  { %3251 = vmatpush2.bf16.msra.mxu0 %v4936_v47  ;;  %v5003_v33 = vld [vmem:[#allocation5 + $0x624] ss:$16 sps:$4 sm:$0xff]   ;;  %v5001_v36 = vld [vmem:[#allocation5 + $0x620] ss:$16 sps:$4 sm:$0xff]  }
  0x7b   :  { %3292 = vmatpush2.bf16.msra.mxu1 %v4937_v48  ;;  %3252 = vmatprep.subr.bf16.mxu0 %v4938_v51  ;;  %v5006_v39 = vld [vmem:[#allocation5 + $0x404] ss:$16 sps:$4 sm:$0xff]   ;;  %v5004_v42 = vld [vmem:[#allocation5 + $0x400] ss:$16 sps:$4 sm:$0xff]  }
  0x7c   :  { %3293 = vmatprep.subr.bf16.mxu1 %v4940_v53  ;;  %v5009_v41 = vld [vmem:[#allocation5 + $0x604] ss:$16 sps:$4 sm:$0xff]   ;;  %v5007_v43 = vld [vmem:[#allocation5 + $0x600] ss:$16 sps:$4 sm:$0xff]  }
  0x7d   :  { %v5012_v44 = vld [vmem:[#allocation5 + $0x5e4] ss:$16 sps:$4 sm:$0xff]   ;;  %v5010_v46 = vld [vmem:[#allocation5 + $0x5e0] ss:$16 sps:$4 sm:$0xff]  }
  0x7e   :  { %3253 = vmatpush2.bf16.msra.mxu0 %v4942_v54  ;;  %v5015_v45 = vld [vmem:[#allocation5 + $0x7e4] ss:$16 sps:$4 sm:$0xff]   ;;  %v5013_v47 = vld [vmem:[#allocation5 + $0x7e0] ss:$16 sps:$4 sm:$0xff]  }
  0x7f   :  { %3294 = vmatpush2.bf16.msra.mxu1 %v4943_v55  ;;  %3254 = vmatprep.subr.bf16.mxu0 %v4944_v56  ;;  %v5018_v48 = vld [vmem:[#allocation5 + $0x5c4] ss:$16 sps:$4 sm:$0xff]   ;;  %v5016_v51 = vld [vmem:[#allocation5 + $0x5c0] ss:$16 sps:$4 sm:$0xff]  }
  0x80   :  { %3295 = vmatprep.subr.bf16.mxu1 %v4946_v57  ;;  %v5021_v50 = vld [vmem:[#allocation5 + $0x7c4] ss:$16 sps:$4 sm:$0xff]   ;;  %v5019_v53 = vld [vmem:[#allocation5 + $0x7c0] ss:$16 sps:$4 sm:$0xff]  }
  0x81   :  { %v5024_v54 = vld [vmem:[#allocation5 + $0x5a4] ss:$16 sps:$4 sm:$0xff]   ;;  %v5022_v56 = vld [vmem:[#allocation5 + $0x5a0] ss:$16 sps:$4 sm:$0xff]  }
  0x82   :  { %3255 = vmatpush2.bf16.msra.mxu0 %v4948_v58  ;;  %v5027_v55 = vld [vmem:[#allocation5 + $0x7a4] ss:$16 sps:$4 sm:$0xff]   ;;  %v5025_v57 = vld [vmem:[#allocation5 + $0x7a0] ss:$16 sps:$4 sm:$0xff]  }
  0x83   :  { %3296 = vmatpush2.bf16.msra.mxu1 %v4949_v59  ;;  %3256 = vmatprep.subr.bf16.mxu0 %v4950_v60  ;;  %v5030_v58 = vld [vmem:[#allocation5 + $0x584] ss:$16 sps:$4 sm:$0xff]   ;;  %v5028_v60 = vld [vmem:[#allocation5 + $0x580] ss:$16 sps:$4 sm:$0xff]  }
  0x84   :  { %3297 = vmatprep.subr.bf16.mxu1 %v4952_v61  ;;  %v5033_v59 = vld [vmem:[#allocation5 + $0x784] ss:$16 sps:$4 sm:$0xff]   ;;  %v5031_v61 = vld [vmem:[#allocation5 + $0x780] ss:$16 sps:$4 sm:$0xff]  }
  0x85   :  { %v5040_v4 = vld [vmem:[#allocation5 + $0x540] ss:$16 sps:$4 sm:$0xff]   ;;  %v5081_v38 = vld [vmem:[#allocation5 + $0xa84] ss:$16 sps:$4 sm:$0xff]  }
  0x86   :  { %3257 = vmatpush2.bf16.msra.mxu0 %v4954_v62  ;;  %v5036_v62 = vld [vmem:[#allocation5 + $0x564] ss:$16 sps:$4 sm:$0xff]   ;;  %v5043_v5 = vld [vmem:[#allocation5 + $0x740] ss:$16 sps:$4 sm:$0xff]  }
  0x87   :  { %3298 = vmatpush2.bf16.msra.mxu1 %v4955_v63  ;;  %3258 = vmatprep.subr.bf16.mxu0 %v4956_v0  ;;  %v5039_v63 = vld [vmem:[#allocation5 + $0x764] ss:$16 sps:$4 sm:$0xff]   ;;  %v5034_v0 = vld [vmem:[#allocation5 + $0x560] ss:$16 sps:$4 sm:$0xff]  }
  0x88   :  { %3299 = vmatprep.subr.bf16.mxu1 %v4958_v1  ;;  %v5037_v1 = vld [vmem:[#allocation5 + $0x760] ss:$16 sps:$4 sm:$0xff]  }
  0x89   :  { %v5070_v34 = vld [vmem:[#allocation5 + $0x8a0] ss:$16 sps:$4 sm:$0xff]  }
  0x8a   :  { %3259 = vmatpush2.bf16.msra.mxu0 %v4960_v2  ;;  %v5042_v2 = vld [vmem:[#allocation5 + $0x544] ss:$16 sps:$4 sm:$0xff]  }
  0x8b   :  { %3300 = vmatpush2.bf16.msra.mxu1 %v4961_v3  ;;  %3310 = vmatprep.subr.bf16.mxu0 %v4964_v6  ;;  %v5045_v3 = vld [vmem:[#allocation5 + $0x744] ss:$16 sps:$4 sm:$0xff]  }
  0x8c   :  { %3351 = vmatprep.subr.bf16.mxu1 %v4967_v7  ;;  %v5048_v6 = vld [vmem:[#allocation5 + $0x524] ss:$16 sps:$4 sm:$0xff]  }
  0x8d   :  { %3261 = vmatmul.mubr.bf16.vlgmr.msra.gmra.mxu0 %v5873_v8  ;;  %v5051_v7 = vld [vmem:[#allocation5 + $0x724] ss:$16 sps:$4 sm:$0xff]  }
  0x8e   :  { %3302 = vmatmul.mubr.bf16.vlgmr.msra.gmra.mxu1 %v5875_v9  ;;  %3311 = vmatpush1.bf16.msra.mxu0 %v4962_v10  ;;  %v5046_v10 = vld [vmem:[#allocation5 + $0x520] ss:$16 sps:$4 sm:$0xff]  }
  0x8f   :  { %3352 = vmatpush1.bf16.msra.mxu1 %v4965_v11  ;;  %3312 = vmatprep.subr.bf16.mxu0 %v4970_v12  ;;  %v5049_v11 = vld [vmem:[#allocation5 + $0x720] ss:$16 sps:$4 sm:$0xff]   ;;  %v5054_v12 = vld [vmem:[#allocation5 + $0x504] ss:$16 sps:$4 sm:$0xff]  }
  0x90   :  { %3353 = vmatprep.subr.bf16.mxu1 %v4973_v13  ;;  %3342 = vmatprep.mubr.bf16.mxu0 %v5879_v37  ;;  %v5057_v13 = vld [vmem:[#allocation5 + $0x704] ss:$16 sps:$4 sm:$0xff]  }
  0x91   :  { %3383 = vmatprep.mubr.bf16.mxu1 %v5881_v40 }
  0x92   :  { %3313 = vmatpush1.bf16.msra.mxu0 %v4968_v14  ;;  %v5052_v14 = vld [vmem:[#allocation5 + $0x500] ss:$16 sps:$4 sm:$0xff]  }
  0x93   :  { %3354 = vmatpush1.bf16.msra.mxu1 %v4971_v15  ;;  %3314 = vmatprep.subr.bf16.mxu0 %v4976_v16  ;;  %v5055_v15 = vld [vmem:[#allocation5 + $0x700] ss:$16 sps:$4 sm:$0xff]  }
  0x94   :  { %3355 = vmatprep.subr.bf16.mxu1 %v4979_v17  ;;  %v106_v16 = vld [vmem:[#allocation3 + $0x20] sm:$0xff]  ;;  %v108_v17 = vld [vmem:[#allocation3 + $0x30] sm:$0xff] }
  0x96   :  { %3315 = vmatpush1.bf16.msra.mxu0 %v4974_v18  ;;  %v5060_v18 = vld [vmem:[#allocation5 + $0x8e4] ss:$16 sps:$4 sm:$0xff]  }
  0x97   :  { %3356 = vmatpush1.bf16.msra.mxu1 %v4977_v19  ;;  %3316 = vmatprep.subr.bf16.mxu0 %v4982_v20  ;;  %v5063_v19 = vld [vmem:[#allocation5 + $0xae4] ss:$16 sps:$4 sm:$0xff]   ;;  %v5885_v20 = vpack.c.bf16 %v106_v16, %v106_v16  ;;  %v5130_v16 = vld [vmem:[#allocation5 + $0x960] ss:$16 sps:$4 sm:$0xff]  }
  0x98   :  { %3357 = vmatprep.subr.bf16.mxu1 %v4985_v21  ;;  %v5887_v21 = vpack.c.bf16 %v108_v17, %v108_v17  ;;  %v5133_v17 = vld [vmem:[#allocation5 + $0xb60] ss:$16 sps:$4 sm:$0xff]  }
  0x9a   :  { %3317 = vmatpush1.bf16.msra.mxu0 %v4980_v22  ;;  %v5058_v22 = vld [vmem:[#allocation5 + $0x8e0] ss:$16 sps:$4 sm:$0xff]  }
  0x9b   :  { %3358 = vmatpush1.bf16.msra.mxu1 %v4983_v23  ;;  %3318 = vmatprep.subr.bf16.mxu0 %v4988_v24  ;;  %v5061_v23 = vld [vmem:[#allocation5 + $0xae0] ss:$16 sps:$4 sm:$0xff]   ;;  %v5066_v24 = vld [vmem:[#allocation5 + $0x8c4] ss:$16 sps:$4 sm:$0xff]  }
  0x9c   :  { %3359 = vmatprep.subr.bf16.mxu1 %v4991_v25  ;;  %v5069_v25 = vld [vmem:[#allocation5 + $0xac4] ss:$16 sps:$4 sm:$0xff]  }
  0x9e   :  { %3319 = vmatpush1.bf16.msra.mxu0 %v4986_v26  ;;  %v111_v26 = vld [vmem:[#allocation3 + $0x48] sm:$0xff] }
  0x9f   :  { %3360 = vmatpush1.bf16.msra.mxu1 %v4989_v27  ;;  %3320 = vmatprep.subr.bf16.mxu0 %v4994_v28  ;;  %v5064_v27 = vld [vmem:[#allocation5 + $0x8c0] ss:$16 sps:$4 sm:$0xff]  }
  0xa0   :  { %3361 = vmatprep.subr.bf16.mxu1 %v4997_v29  ;;  %v5067_v28 = vld [vmem:[#allocation5 + $0xac0] ss:$16 sps:$4 sm:$0xff]   ;;  %v5891_v29 = vpack.c.bf16 %v111_v26, %v111_v26 }
  0xa1   :  { %v5142_v26 = vld [vmem:[#allocation5 + $0x920] ss:$16 sps:$4 sm:$0xff]  }
  0xa2   :  { %3321 = vmatpush1.bf16.msra.mxu0 %v4992_v30  ;;  %v113_v30 = vld [vmem:[#allocation3 + $0x58] sm:$0xff] }
  0xa3   :  { %3362 = vmatpush1.bf16.msra.mxu1 %v4995_v31  ;;  %3322 = vmatprep.subr.bf16.mxu0 %v5000_v32  ;;  %v5072_v31 = vld [vmem:[#allocation5 + $0x8a4] ss:$16 sps:$4 sm:$0xff]   ;;  %v5893_v32 = vpack.c.bf16 %v113_v30, %v113_v30 }
  0xa4   :  { %3363 = vmatprep.subr.bf16.mxu1 %v5003_v33  ;;  %v5075_v33 = vld [vmem:[#allocation5 + $0xaa4] ss:$16 sps:$4 sm:$0xff]  }
  0xa5   :  { %v5153_v30 = vld [vmem:[#allocation5 + $0xb04] ss:$16 sps:$4 sm:$0xff]  }
  0xa6   :  { %3323 = vmatpush1.bf16.msra.mxu0 %v4998_v35  ;;  %v5073_v35 = vld [vmem:[#allocation5 + $0xaa0] ss:$16 sps:$4 sm:$0xff]  }
  0xa7   :  { %3364 = vmatpush1.bf16.msra.mxu1 %v5001_v36  ;;  %3324 = vmatprep.subr.bf16.mxu0 %v5006_v39  ;;  %v5078_v36 = vld [vmem:[#allocation5 + $0x884] ss:$16 sps:$4 sm:$0xff]   ;;  %v5076_v39 = vld [vmem:[#allocation5 + $0x880] ss:$16 sps:$4 sm:$0xff]  }
  0xa8   :  { %3365 = vmatprep.subr.bf16.mxu1 %v5009_v41  ;;  %v5079_v41 = vld [vmem:[#allocation5 + $0xa80] ss:$16 sps:$4 sm:$0xff]  }
  0xaa   :  { %3325 = vmatpush1.bf16.msra.mxu0 %v5004_v42  ;;  %v5084_v42 = vld [vmem:[#allocation5 + $0x864] ss:$16 sps:$4 sm:$0xff]  }
  0xab   :  { %3366 = vmatpush1.bf16.msra.mxu1 %v5007_v43  ;;  %3326 = vmatprep.subr.bf16.mxu0 %v5012_v44  ;;  %v5087_v43 = vld [vmem:[#allocation5 + $0xa64] ss:$16 sps:$4 sm:$0xff]   ;;  %v5082_v44 = vld [vmem:[#allocation5 + $0x860] ss:$16 sps:$4 sm:$0xff]  }
  0xac   :  { %3367 = vmatprep.subr.bf16.mxu1 %v5015_v45  ;;  %v5085_v45 = vld [vmem:[#allocation5 + $0xa60] ss:$16 sps:$4 sm:$0xff]  }
  0xae   :  { %3327 = vmatpush2.bf16.msra.mxu0 %v5010_v46  ;;  %v5090_v46 = vld [vmem:[#allocation5 + $0x844] ss:$16 sps:$4 sm:$0xff]  }
  0xaf   :  { %3368 = vmatpush2.bf16.msra.mxu1 %v5013_v47  ;;  %3328 = vmatprep.subr.bf16.mxu0 %v5018_v48  ;;  %v5093_v47 = vld [vmem:[#allocation5 + $0xa44] ss:$16 sps:$4 sm:$0xff]   ;;  %v5088_v48 = vld [vmem:[#allocation5 + $0x840] ss:$16 sps:$4 sm:$0xff]  }
  0xb0   :  { %3369 = vmatprep.subr.bf16.mxu1 %v5021_v50  ;;  %v5091_v50 = vld [vmem:[#allocation5 + $0xa40] ss:$16 sps:$4 sm:$0xff]  }
  0xb2   :  { %3329 = vmatpush2.bf16.msra.mxu0 %v5016_v51  ;;  %v5096_v51 = vld [vmem:[#allocation5 + $0x824] ss:$16 sps:$4 sm:$0xff]  }
  0xb3   :  { %3370 = vmatpush2.bf16.msra.mxu1 %v5019_v53  ;;  %3330 = vmatprep.subr.bf16.mxu0 %v5024_v54  ;;  %v5099_v53 = vld [vmem:[#allocation5 + $0xa24] ss:$16 sps:$4 sm:$0xff]   ;;  %v5094_v54 = vld [vmem:[#allocation5 + $0x820] ss:$16 sps:$4 sm:$0xff]  }
  0xb4   :  { %3371 = vmatprep.subr.bf16.mxu1 %v5027_v55  ;;  %v5097_v55 = vld [vmem:[#allocation5 + $0xa20] ss:$16 sps:$4 sm:$0xff]  }
  0xb6   :  { %3331 = vmatpush2.bf16.msra.mxu0 %v5022_v56  ;;  %v5102_v56 = vld [vmem:[#allocation5 + $0x804] ss:$16 sps:$4 sm:$0xff]  }
  0xb7   :  { %3372 = vmatpush2.bf16.msra.mxu1 %v5025_v57  ;;  %3332 = vmatprep.subr.bf16.mxu0 %v5030_v58  ;;  %v5105_v57 = vld [vmem:[#allocation5 + $0xa04] ss:$16 sps:$4 sm:$0xff]   ;;  %v5100_v58 = vld [vmem:[#allocation5 + $0x800] ss:$16 sps:$4 sm:$0xff]  }
  0xb8   :  { %3373 = vmatprep.subr.bf16.mxu1 %v5033_v59  ;;  %v5103_v59 = vld [vmem:[#allocation5 + $0xa00] ss:$16 sps:$4 sm:$0xff]  }
  0xba   :  { %3333 = vmatpush2.bf16.msra.mxu0 %v5028_v60  ;;  %v5108_v60 = vld [vmem:[#allocation5 + $0x9e4] ss:$16 sps:$4 sm:$0xff]  }
  0xbb   :  { %3374 = vmatpush2.bf16.msra.mxu1 %v5031_v61  ;;  %3334 = vmatprep.subr.bf16.mxu0 %v5036_v62  ;;  %v5111_v61 = vld [vmem:[#allocation5 + $0xbe4] ss:$16 sps:$4 sm:$0xff]   ;;  %v5106_v62 = vld [vmem:[#allocation5 + $0x9e0] ss:$16 sps:$4 sm:$0xff]  }
  0xbc   :  { %3375 = vmatprep.subr.bf16.mxu1 %v5039_v63  ;;  %v5109_v63 = vld [vmem:[#allocation5 + $0xbe0] ss:$16 sps:$4 sm:$0xff]  }
  0xbe   :  { %3335 = vmatpush2.bf16.msra.mxu0 %v5034_v0  ;;  %v5114_v0 = vld [vmem:[#allocation5 + $0x9c4] ss:$16 sps:$4 sm:$0xff]  }
  0xbf   :  { %3376 = vmatpush2.bf16.msra.mxu1 %v5037_v1  ;;  %3336 = vmatprep.subr.bf16.mxu0 %v5042_v2  ;;  %v5117_v1 = vld [vmem:[#allocation5 + $0xbc4] ss:$16 sps:$4 sm:$0xff]   ;;  %v5112_v2 = vld [vmem:[#allocation5 + $0x9c0] ss:$16 sps:$4 sm:$0xff]  }
  0xc0   :  { %3377 = vmatprep.subr.bf16.mxu1 %v5045_v3  ;;  %v5115_v3 = vld [vmem:[#allocation5 + $0xbc0] ss:$16 sps:$4 sm:$0xff]  }
  0xc2   :  { %3337 = vmatpush2.bf16.msra.mxu0 %v5040_v4  ;;  %v5120_v4 = vld [vmem:[#allocation5 + $0x9a4] ss:$16 sps:$4 sm:$0xff]  }
  0xc3   :  { %3378 = vmatpush2.bf16.msra.mxu1 %v5043_v5  ;;  %3338 = vmatprep.subr.bf16.mxu0 %v5048_v6  ;;  %v5123_v5 = vld [vmem:[#allocation5 + $0xba4] ss:$16 sps:$4 sm:$0xff]   ;;  %v5118_v6 = vld [vmem:[#allocation5 + $0x9a0] ss:$16 sps:$4 sm:$0xff]  }
  0xc4   :  { %3379 = vmatprep.subr.bf16.mxu1 %v5051_v7  ;;  %v5121_v7 = vld [vmem:[#allocation5 + $0xba0] ss:$16 sps:$4 sm:$0xff]  }
  0xc6   :  { %3339 = vmatpush2.bf16.msra.mxu0 %v5046_v10  ;;  %v5126_v10 = vld [vmem:[#allocation5 + $0x984] ss:$16 sps:$4 sm:$0xff]  }
  0xc7   :  { %3380 = vmatpush2.bf16.msra.mxu1 %v5049_v11  ;;  %3340 = vmatprep.subr.bf16.mxu0 %v5054_v12  ;;  %v5129_v11 = vld [vmem:[#allocation5 + $0xb84] ss:$16 sps:$4 sm:$0xff]   ;;  %v5124_v12 = vld [vmem:[#allocation5 + $0x980] ss:$16 sps:$4 sm:$0xff]  }
  0xc8   :  { %3381 = vmatprep.subr.bf16.mxu1 %v5057_v13  ;;  %v5127_v13 = vld [vmem:[#allocation5 + $0xb80] ss:$16 sps:$4 sm:$0xff]  }
  0xca   :  { %3341 = vmatpush2.bf16.msra.mxu0 %v5052_v14  ;;  %v5132_v14 = vld [vmem:[#allocation5 + $0x964] ss:$16 sps:$4 sm:$0xff]  }
  0xcb   :  { %3382 = vmatpush2.bf16.msra.mxu1 %v5055_v15  ;;  %3392 = vmatprep.subr.bf16.mxu0 %v5060_v18  ;;  %v5135_v15 = vld [vmem:[#allocation5 + $0xb64] ss:$16 sps:$4 sm:$0xff]  }
  0xcc   :  { %3433 = vmatprep.subr.bf16.mxu1 %v5063_v19  ;;  %v5138_v18 = vld [vmem:[#allocation5 + $0x944] ss:$16 sps:$4 sm:$0xff]  }
  0xcd   :  { %3343 = vmatmul.mubr.bf16.vlgmr.msra.gmra.mxu0 %v5885_v20  ;;  %v5141_v19 = vld [vmem:[#allocation5 + $0xb44] ss:$16 sps:$4 sm:$0xff]  }
  0xce   :  { %3384 = vmatmul.mubr.bf16.vlgmr.msra.gmra.mxu1 %v5887_v21  ;;  %3393 = vmatpush1.bf16.msra.mxu0 %v5058_v22  ;;  %v5136_v22 = vld [vmem:[#allocation5 + $0x940] ss:$16 sps:$4 sm:$0xff]  }
  0xcf   :  { %3434 = vmatpush1.bf16.msra.mxu1 %v5061_v23  ;;  %3394 = vmatprep.subr.bf16.mxu0 %v5066_v24  ;;  %v5139_v23 = vld [vmem:[#allocation5 + $0xb40] ss:$16 sps:$4 sm:$0xff]   ;;  %v5144_v24 = vld [vmem:[#allocation5 + $0x924] ss:$16 sps:$4 sm:$0xff]  }
  0xd0   :  { %3435 = vmatprep.subr.bf16.mxu1 %v5069_v25  ;;  %3424 = vmatprep.mubr.bf16.mxu0 %v5891_v29  ;;  %v5147_v25 = vld [vmem:[#allocation5 + $0xb24] ss:$16 sps:$4 sm:$0xff]  }
  0xd1   :  { %3465 = vmatprep.mubr.bf16.mxu1 %v5893_v32 }
  0xd2   :  { %3395 = vmatpush1.bf16.msra.mxu0 %v5064_v27  ;;  %v5145_v27 = vld [vmem:[#allocation5 + $0xb20] ss:$16 sps:$4 sm:$0xff]  }
  0xd3   :  { %3436 = vmatpush1.bf16.msra.mxu1 %v5067_v28  ;;  %3396 = vmatprep.subr.bf16.mxu0 %v5072_v31  ;;  %v5150_v28 = vld [vmem:[#allocation5 + $0x904] ss:$16 sps:$4 sm:$0xff]   ;;  %v5148_v31 = vld [vmem:[#allocation5 + $0x900] ss:$16 sps:$4 sm:$0xff]  }
  0xd4   :  { %3437 = vmatprep.subr.bf16.mxu1 %v5075_v33  ;;  %v5151_v33 = vld [vmem:[#allocation5 + $0xb00] ss:$16 sps:$4 sm:$0xff]  }
  0xd6   :  { %3397 = vmatpush1.bf16.msra.mxu0 %v5070_v34  ;;  %v110_v34 = vld [vmem:[#allocation3 + $0x40] sm:$0xff] }
  0xd7   :  { %3438 = vmatpush1.bf16.msra.mxu1 %v5073_v35  ;;  %3398 = vmatprep.subr.bf16.mxu0 %v5078_v36  ;;  %v112_v35 = vld [vmem:[#allocation3 + $0x50] sm:$0xff] }
  0xd8   :  { %3439 = vmatprep.subr.bf16.mxu1 %v5081_v38  ;;  %v5156_v36 = vld [vmem:[#allocation5 + $0xce4] ss:$16 sps:$4 sm:$0xff]  }
  0xd9   :  { %v5159_v38 = vld [vmem:[#allocation5 + $0xee4] ss:$16 sps:$4 sm:$0xff]  }
  0xda   :  { %3399 = vmatpush1.bf16.msra.mxu0 %v5076_v39  ;;  %v5154_v39 = vld [vmem:[#allocation5 + $0xce0] ss:$16 sps:$4 sm:$0xff]  }
  0xdb   :  { %3440 = vmatpush1.bf16.msra.mxu1 %v5079_v41  ;;  %3400 = vmatprep.subr.bf16.mxu0 %v5084_v42  ;;  %v115_v41 = vld [vmem:[#allocation3 + $0x68] sm:$0xff]  ;;  %v5897_v42 = vpack.c.bf16 %v110_v34, %v110_v34  ;;  %v5220_v34 = vld [vmem:[#allocation5 + $0xd80] ss:$16 sps:$4 sm:$0xff]  }
  0xdc   :  { %3441 = vmatprep.subr.bf16.mxu1 %v5087_v43  ;;  %v5899_v43 = vpack.c.bf16 %v112_v35, %v112_v35  ;;  %v5223_v35 = vld [vmem:[#allocation5 + $0xf80] ss:$16 sps:$4 sm:$0xff]  }
  0xde   :  { %3401 = vmatpush1.bf16.msra.mxu0 %v5082_v44  ;;  %v117_v44 = vld [vmem:[#allocation3 + $0x78] sm:$0xff] }
  0xdf   :  { %3442 = vmatpush1.bf16.msra.mxu1 %v5085_v45  ;;  %3402 = vmatprep.subr.bf16.mxu0 %v5090_v46  ;;  %v5157_v45 = vld [vmem:[#allocation5 + $0xee0] ss:$16 sps:$4 sm:$0xff]   ;;  %v5162_v46 = vld [vmem:[#allocation5 + $0xcc4] ss:$16 sps:$4 sm:$0xff]  }
  0xe0   :  { %3443 = vmatprep.subr.bf16.mxu1 %v5093_v47  ;;  %v5165_v47 = vld [vmem:[#allocation5 + $0xec4] ss:$16 sps:$4 sm:$0xff]  }
  0xe2   :  { %3403 = vmatpush1.bf16.msra.mxu0 %v5088_v48  ;;  %v5901_v48 = vpack.c.bf16 %v115_v41, %v115_v41  ;;  %v5229_v41 = vld [vmem:[#allocation5 + $0xf60] ss:$16 sps:$4 sm:$0xff]  }
  0xe3   :  { %3444 = vmatpush1.bf16.msra.mxu1 %v5091_v50  ;;  %3404 = vmatprep.subr.bf16.mxu0 %v5096_v51  ;;  %v5903_v50 = vpack.c.bf16 %v117_v44, %v117_v44  ;;  %v5160_v51 = vld [vmem:[#allocation5 + $0xcc0] ss:$16 sps:$4 sm:$0xff]   ;;  %v5234_v44 = vld [vmem:[#allocation5 + $0xd44] ss:$16 sps:$4 sm:$0xff]  }
  0xe4   :  { %3445 = vmatprep.subr.bf16.mxu1 %v5099_v53  ;;  %v5163_v53 = vld [vmem:[#allocation5 + $0xec0] ss:$16 sps:$4 sm:$0xff]  }
  0xe6   :  { %3405 = vmatpush1.bf16.msra.mxu0 %v5094_v54  ;;  %v5168_v54 = vld [vmem:[#allocation5 + $0xca4] ss:$16 sps:$4 sm:$0xff]  }
  0xe7   :  { %3446 = vmatpush1.bf16.msra.mxu1 %v5097_v55  ;;  %3406 = vmatprep.subr.bf16.mxu0 %v5102_v56  ;;  %v5171_v55 = vld [vmem:[#allocation5 + $0xea4] ss:$16 sps:$4 sm:$0xff]   ;;  %v5166_v56 = vld [vmem:[#allocation5 + $0xca0] ss:$16 sps:$4 sm:$0xff]  }
  0xe8   :  { %3447 = vmatprep.subr.bf16.mxu1 %v5105_v57  ;;  %v5169_v57 = vld [vmem:[#allocation5 + $0xea0] ss:$16 sps:$4 sm:$0xff]  }
  0xea   :  { %3407 = vmatpush1.bf16.msra.mxu0 %v5100_v58  ;;  %v5174_v58 = vld [vmem:[#allocation5 + $0xc84] ss:$16 sps:$4 sm:$0xff]  }
  0xeb   :  { %3448 = vmatpush1.bf16.msra.mxu1 %v5103_v59  ;;  %3408 = vmatprep.subr.bf16.mxu0 %v5108_v60  ;;  %v5177_v59 = vld [vmem:[#allocation5 + $0xe84] ss:$16 sps:$4 sm:$0xff]   ;;  %v5172_v60 = vld [vmem:[#allocation5 + $0xc80] ss:$16 sps:$4 sm:$0xff]  }
  0xec   :  { %3449 = vmatprep.subr.bf16.mxu1 %v5111_v61  ;;  %v5175_v61 = vld [vmem:[#allocation5 + $0xe80] ss:$16 sps:$4 sm:$0xff]  }
  0xee   :  { %3409 = vmatpush2.bf16.msra.mxu0 %v5106_v62  ;;  %v5180_v62 = vld [vmem:[#allocation5 + $0xc64] ss:$16 sps:$4 sm:$0xff]  }
  0xef   :  { %3450 = vmatpush2.bf16.msra.mxu1 %v5109_v63  ;;  %3410 = vmatprep.subr.bf16.mxu0 %v5114_v0  ;;  %v5183_v63 = vld [vmem:[#allocation5 + $0xe64] ss:$16 sps:$4 sm:$0xff]   ;;  %v5178_v0 = vld [vmem:[#allocation5 + $0xc60] ss:$16 sps:$4 sm:$0xff]  }
  0xf0   :  { %3451 = vmatprep.subr.bf16.mxu1 %v5117_v1  ;;  %v5181_v1 = vld [vmem:[#allocation5 + $0xe60] ss:$16 sps:$4 sm:$0xff]  }
  0xf2   :  { %3411 = vmatpush2.bf16.msra.mxu0 %v5112_v2  ;;  %v5186_v2 = vld [vmem:[#allocation5 + $0xc44] ss:$16 sps:$4 sm:$0xff]  }
  0xf3   :  { %3452 = vmatpush2.bf16.msra.mxu1 %v5115_v3  ;;  %3412 = vmatprep.subr.bf16.mxu0 %v5120_v4  ;;  %v5189_v3 = vld [vmem:[#allocation5 + $0xe44] ss:$16 sps:$4 sm:$0xff]   ;;  %v5184_v4 = vld [vmem:[#allocation5 + $0xc40] ss:$16 sps:$4 sm:$0xff]  }
  0xf4   :  { %3453 = vmatprep.subr.bf16.mxu1 %v5123_v5  ;;  %v5187_v5 = vld [vmem:[#allocation5 + $0xe40] ss:$16 sps:$4 sm:$0xff]  }
  0xf6   :  { %3413 = vmatpush2.bf16.msra.mxu0 %v5118_v6  ;;  %v5192_v6 = vld [vmem:[#allocation5 + $0xc24] ss:$16 sps:$4 sm:$0xff]  }
  0xf7   :  { %3454 = vmatpush2.bf16.msra.mxu1 %v5121_v7  ;;  %3414 = vmatprep.subr.bf16.mxu0 %v5126_v10  ;;  %v5195_v7 = vld [vmem:[#allocation5 + $0xe24] ss:$16 sps:$4 sm:$0xff]   ;;  %v5190_v10 = vld [vmem:[#allocation5 + $0xc20] ss:$16 sps:$4 sm:$0xff]  }
  0xf8   :  { %3455 = vmatprep.subr.bf16.mxu1 %v5129_v11  ;;  %v5193_v11 = vld [vmem:[#allocation5 + $0xe20] ss:$16 sps:$4 sm:$0xff]  }
  0xfa   :  { %3415 = vmatpush2.bf16.msra.mxu0 %v5124_v12  ;;  %v5198_v12 = vld [vmem:[#allocation5 + $0xc04] ss:$16 sps:$4 sm:$0xff]  }
  0xfb   :  { %3456 = vmatpush2.bf16.msra.mxu1 %v5127_v13  ;;  %3416 = vmatprep.subr.bf16.mxu0 %v5132_v14  ;;  %v5201_v13 = vld [vmem:[#allocation5 + $0xe04] ss:$16 sps:$4 sm:$0xff]   ;;  %v5196_v14 = vld [vmem:[#allocation5 + $0xc00] ss:$16 sps:$4 sm:$0xff]  }
  0xfc   :  { %3457 = vmatprep.subr.bf16.mxu1 %v5135_v15  ;;  %v5199_v15 = vld [vmem:[#allocation5 + $0xe00] ss:$16 sps:$4 sm:$0xff]  }
  0xfe   :  { %3417 = vmatpush2.bf16.msra.mxu0 %v5130_v16  ;;  %v5204_v16 = vld [vmem:[#allocation5 + $0xde4] ss:$16 sps:$4 sm:$0xff]  }
  0xff   :  { %3458 = vmatpush2.bf16.msra.mxu1 %v5133_v17  ;;  %3418 = vmatprep.subr.bf16.mxu0 %v5138_v18  ;;  %v5207_v17 = vld [vmem:[#allocation5 + $0xfe4] ss:$16 sps:$4 sm:$0xff]   ;;  %v5202_v18 = vld [vmem:[#allocation5 + $0xde0] ss:$16 sps:$4 sm:$0xff]  }
 0x100   :  { %3459 = vmatprep.subr.bf16.mxu1 %v5141_v19  ;;  %v5205_v19 = vld [vmem:[#allocation5 + $0xfe0] ss:$16 sps:$4 sm:$0xff]  }
 0x102   :  { %3419 = vmatpush2.bf16.msra.mxu0 %v5136_v22  ;;  %v5210_v22 = vld [vmem:[#allocation5 + $0xdc4] ss:$16 sps:$4 sm:$0xff]  }
 0x103   :  { %3460 = vmatpush2.bf16.msra.mxu1 %v5139_v23  ;;  %3420 = vmatprep.subr.bf16.mxu0 %v5144_v24  ;;  %v5213_v23 = vld [vmem:[#allocation5 + $0xfc4] ss:$16 sps:$4 sm:$0xff]   ;;  %v5208_v24 = vld [vmem:[#allocation5 + $0xdc0] ss:$16 sps:$4 sm:$0xff]  }
 0x104   :  { %3461 = vmatprep.subr.bf16.mxu1 %v5147_v25  ;;  %v5211_v25 = vld [vmem:[#allocation5 + $0xfc0] ss:$16 sps:$4 sm:$0xff]  }
 0x106   :  { %3421 = vmatpush2.bf16.msra.mxu0 %v5142_v26  ;;  %v5216_v26 = vld [vmem:[#allocation5 + $0xda4] ss:$16 sps:$4 sm:$0xff]  }
 0x107   :  { %3462 = vmatpush2.bf16.msra.mxu1 %v5145_v27  ;;  %3422 = vmatprep.subr.bf16.mxu0 %v5150_v28  ;;  %v5219_v27 = vld [vmem:[#allocation5 + $0xfa4] ss:$16 sps:$4 sm:$0xff]   ;;  %v5214_v28 = vld [vmem:[#allocation5 + $0xda0] ss:$16 sps:$4 sm:$0xff]  }
 0x108   :  { %3463 = vmatprep.subr.bf16.mxu1 %v5153_v30  ;;  %v5217_v30 = vld [vmem:[#allocation5 + $0xfa0] ss:$16 sps:$4 sm:$0xff]  }
 0x10a   :  { %3423 = vmatpush2.bf16.msra.mxu0 %v5148_v31  ;;  %v5222_v31 = vld [vmem:[#allocation5 + $0xd84] ss:$16 sps:$4 sm:$0xff]  }
 0x10b   :  { %3464 = vmatpush2.bf16.msra.mxu1 %v5151_v33  ;;  %3474 = vmatprep.subr.bf16.mxu0 %v5156_v36  ;;  %v5225_v33 = vld [vmem:[#allocation5 + $0xf84] ss:$16 sps:$4 sm:$0xff]  }
 0x10c   :  { %3515 = vmatprep.subr.bf16.mxu1 %v5159_v38  ;;  %v5228_v36 = vld [vmem:[#allocation5 + $0xd64] ss:$16 sps:$4 sm:$0xff]  }
 0x10d   :  { %3425 = vmatmul.mubr.bf16.vlgmr.msra.gmra.mxu0 %v5897_v42  ;;  %v5231_v38 = vld [vmem:[#allocation5 + $0xf64] ss:$16 sps:$4 sm:$0xff]  }
 0x10e   :  { %3466 = vmatmul.mubr.bf16.vlgmr.msra.gmra.mxu1 %v5899_v43  ;;  %3475 = vmatpush1.bf16.msra.mxu0 %v5154_v39  ;;  %v5226_v39 = vld [vmem:[#allocation5 + $0xd60] ss:$16 sps:$4 sm:$0xff]  }
 0x10f   :  { %3516 = vmatpush1.bf16.msra.mxu1 %v5157_v45  ;;  %3476 = vmatprep.subr.bf16.mxu0 %v5162_v46  ;;  %v5237_v45 = vld [vmem:[#allocation5 + $0xf44] ss:$16 sps:$4 sm:$0xff]   ;;  %v5232_v46 = vld [vmem:[#allocation5 + $0xd40] ss:$16 sps:$4 sm:$0xff]  }
 0x110   :  { %3517 = vmatprep.subr.bf16.mxu1 %v5165_v47  ;;  %3506 = vmatprep.mubr.bf16.mxu0 %v5901_v48  ;;  %v5235_v47 = vld [vmem:[#allocation5 + $0xf40] ss:$16 sps:$4 sm:$0xff]  }
 0x111   :  { %3547 = vmatprep.mubr.bf16.mxu1 %v5903_v50 }
 0x112   :  { %3477 = vmatpush1.bf16.msra.mxu0 %v5160_v51  ;;  %v648_v51 = vlaneseq }
 0x113   :  { %3518 = vmatpush1.bf16.msra.mxu1 %v5163_v53  ;;  %3478 = vmatprep.subr.bf16.mxu0 %v5168_v54  ;;  %v5240_v53 = vld [vmem:[#allocation5 + $0xd24] ss:$16 sps:$4 sm:$0xff]  }
 0x114   :  { %3519 = vmatprep.subr.bf16.mxu1 %v5171_v55  ;;  %v5243_v54 = vld [vmem:[#allocation5 + $0xf24] ss:$16 sps:$4 sm:$0xff]   ;;  %v5238_v55 = vld [vmem:[#allocation5 + $0xd20] ss:$16 sps:$4 sm:$0xff]  }
 0x116   :  { %3479 = vmatpush1.bf16.msra.mxu0 %v5166_v56  ;;  %v5241_v56 = vld [vmem:[#allocation5 + $0xf20] ss:$16 sps:$4 sm:$0xff]  }
 0x117   :  { %3520 = vmatpush1.bf16.msra.mxu1 %v5169_v57  ;;  %3480 = vmatprep.subr.bf16.mxu0 %v5174_v58  ;;  %v5909_v57 = vshrl.u32 %v648_v51, 7  ;;  %v5246_v58 = vld [vmem:[#allocation5 + $0xd04] ss:$16 sps:$4 sm:$0xff]   ;;  %v5285_v51 = vld [vmem:[#allocation5 + $0x24c] ss:$16 sps:$4 sm:$0xff]  }
 0x118   :  { %3521 = vmatprep.subr.bf16.mxu1 %v5177_v59  ;;  %v5249_v59 = vld [vmem:[#allocation5 + $0xf04] ss:$16 sps:$4 sm:$0xff]  }
 0x11a   :  { %3481 = vmatpush1.bf16.msra.mxu0 %v5172_v60  ;;  %v5244_v60 = vld [vmem:[#allocation5 + $0xd00] ss:$16 sps:$4 sm:$0xff]  }
 0x11b   :  { %3522 = vmatpush1.bf16.msra.mxu1 %v5175_v61  ;;  %3482 = vmatprep.subr.bf16.mxu0 %v5180_v62  ;;  %v5247_v61 = vld [vmem:[#allocation5 + $0xf00] ss:$16 sps:$4 sm:$0xff]  }
 0x11c   :  { %3523 = vmatprep.subr.bf16.mxu1 %v5183_v63  ;;  %v646_v62 = vld [vmem:[#allocation7] sm:$0xf] }
 0x11d   :  { %v114_v63 = vld [vmem:[#allocation3 + $0x60] sm:$0xff] }
 0x11e   :  { %3483 = vmatpush1.bf16.msra.mxu0 %v5178_v0  ;;  %v650_v0 = vsub.s32 0, %v5909_v57 }
 0x11f   :  { %3524 = vmatpush1.bf16.msra.mxu1 %v5181_v1  ;;  %3484 = vmatprep.subr.bf16.mxu0 %v5186_v2  ;;  %v116_v1 = vld [vmem:[#allocation3 + $0x70] sm:$0xff]  ;;  %v5252_v2 = vld [vmem:[#allocation5 + $0xec] ss:$16 sps:$4 sm:$0xff]  }
 0x120   :  { %3525 = vmatprep.subr.bf16.mxu1 %v5189_v3  ;;  %v5255_v3 = vld [vmem:[#allocation5 + $0x2ec] ss:$16 sps:$4 sm:$0xff]  }
 0x122   :  { %3485 = vmatpush1.bf16.msra.mxu0 %v5184_v4  ;;  %v654_v4 = vsub.s32 1, %v5909_v57 }
 0x123   :  { %3526 = vmatpush1.bf16.msra.mxu1 %v5187_v5  ;;  %3486 = vmatprep.subr.bf16.mxu0 %v5192_v6  ;;  %v5913_v5 = vpack.c.bf16 %v114_v63, %v114_v63  ;;  %v5915_v6 = vpack.c.bf16 %v116_v1, %v116_v1  ;;  %v5295_v63 = vld [vmem:[#allocation5 + $0x208] ss:$16 sps:$4 sm:$0xff]   ;;  %v5303_v1 = vld [vmem:[#allocation5 + $0x3ec] ss:$16 sps:$4 sm:$0xff]  }
 0x124   :  { %3527 = vmatprep.subr.bf16.mxu1 %v5195_v7  ;;  %v5250_v7 = vld [vmem:[#allocation5 + $0xe8] ss:$16 sps:$4 sm:$0xff]  }
 0x126   :  { %3487 = vmatpush1.bf16.msra.mxu0 %v5190_v10  ;;  %v651_v10 = vrot.slane %v646_v62, %v650_v0  ;;  %v5300_v0 = vld [vmem:[#allocation5 + $0x1ec] ss:$16 sps:$4 sm:$0xff]  }
 0x127   :  { %3528 = vmatpush1.bf16.msra.mxu1 %v5193_v11  ;;  %3488 = vmatprep.subr.bf16.mxu0 %v5198_v12  ;;  %v5253_v11 = vld [vmem:[#allocation5 + $0x2e8] ss:$16 sps:$4 sm:$0xff]   ;;  %v5258_v12 = vld [vmem:[#allocation5 + $0xcc] ss:$16 sps:$4 sm:$0xff]  }
 0x128   :  { %3529 = vmatprep.subr.bf16.mxu1 %v5201_v13  ;;  %v5261_v13 = vld [vmem:[#allocation5 + $0x2cc] ss:$16 sps:$4 sm:$0xff]  }
 0x12a   :  { %3489 = vmatpush1.bf16.msra.mxu0 %v5196_v14  ;;  %v655_v14 = vrot.slane %v646_v62, %v654_v4  ;;  %v5292_v62 = vld [vmem:[#allocation5 + $0x8] ss:$16 sps:$4 sm:$0xff]   ;;  %v5306_v4 = vld [vmem:[#allocation5 + $0x1cc] ss:$16 sps:$4 sm:$0xff]  }
 0x12b   :  { %3530 = vmatpush1.bf16.msra.mxu1 %v5199_v15  ;;  %3490 = vmatprep.subr.bf16.mxu0 %v5204_v16 }
 0x12c   :  { %3531 = vmatprep.subr.bf16.mxu1 %v5207_v17  ;;  %v5256_v17 = vld [vmem:[#allocation5 + $0xc8] ss:$16 sps:$4 sm:$0xff]  }
 0x12e   :  { %3491 = vmatpush2.bf16.msra.mxu0 %v5202_v18 }
 0x12f   :  { %3532 = vmatpush2.bf16.msra.mxu1 %v5205_v19  ;;  %3492 = vmatprep.subr.bf16.mxu0 %v5210_v22  ;;  %v5259_v19 = vld [vmem:[#allocation5 + $0x2c8] ss:$16 sps:$4 sm:$0xff]  }
 0x130   :  { %3533 = vmatprep.subr.bf16.mxu1 %v5213_v23 }
 0x132   :  { %3493 = vmatpush2.bf16.msra.mxu0 %v5208_v24  ;;  %v5264_v24 = vld [vmem:[#allocation5 + $0xac] ss:$16 sps:$4 sm:$0xff]  }
 0x133   :  { %3534 = vmatpush2.bf16.msra.mxu1 %v5211_v25  ;;  %3494 = vmatprep.subr.bf16.mxu0 %v5216_v26  ;;  %v5267_v25 = vld [vmem:[#allocation5 + $0x2ac] ss:$16 sps:$4 sm:$0xff]  }
 0x134   :  { %3535 = vmatprep.subr.bf16.mxu1 %v5219_v27 }
 0x136   :  { %3495 = vmatpush2.bf16.msra.mxu0 %v5214_v28 }
 0x137   :  { %3536 = vmatpush2.bf16.msra.mxu1 %v5217_v30  ;;  %3496 = vmatprep.subr.bf16.mxu0 %v5222_v31  ;;  %v5262_v31 = vld [vmem:[#allocation5 + $0xa8] ss:$16 sps:$4 sm:$0xff]  }
 0x138   :  { %3537 = vmatprep.subr.bf16.mxu1 %v5225_v33 }
 0x13a   :  { %3497 = vmatpush2.bf16.msra.mxu0 %v5220_v34  ;;  %v5265_v34 = vld [vmem:[#allocation5 + $0x2a8] ss:$16 sps:$4 sm:$0xff]  }
 0x13b   :  { %3538 = vmatpush2.bf16.msra.mxu1 %v5223_v35  ;;  %3498 = vmatprep.subr.bf16.mxu0 %v5228_v36 }
 0x13c   :  { %3539 = vmatprep.subr.bf16.mxu1 %v5231_v38  ;;  %v5270_v38 = vld [vmem:[#allocation5 + $0x8c] ss:$16 sps:$4 sm:$0xff]  }
 0x13e   :  { %3499 = vmatpush2.bf16.msra.mxu0 %v5226_v39  ;;  %v5273_v39 = vld [vmem:[#allocation5 + $0x28c] ss:$16 sps:$4 sm:$0xff]  }
 0x13f   :  { %3540 = vmatpush2.bf16.msra.mxu1 %v5229_v41  ;;  %3500 = vmatprep.subr.bf16.mxu0 %v5234_v44  ;;  %v5268_v41 = vld [vmem:[#allocation5 + $0x88] ss:$16 sps:$4 sm:$0xff]   ;;  %v5279_v44 = vld [vmem:[#allocation5 + $0x26c] ss:$16 sps:$4 sm:$0xff]  }
 0x140   :  { %3541 = vmatprep.subr.bf16.mxu1 %v5237_v45  ;;  %v5274_v45 = vld [vmem:[#allocation5 + $0x68] ss:$16 sps:$4 sm:$0xff]  }
 0x142   :  { %3501 = vmatpush2.bf16.msra.mxu0 %v5232_v46  ;;  %v5277_v46 = vld [vmem:[#allocation5 + $0x268] ss:$16 sps:$4 sm:$0xff]  }
 0x143   :  { %3542 = vmatpush2.bf16.msra.mxu1 %v5235_v47  ;;  %3502 = vmatprep.subr.bf16.mxu0 %v5240_v53  ;;  %v5282_v47 = vld [vmem:[#allocation5 + $0x4c] ss:$16 sps:$4 sm:$0xff]   ;;  %v5280_v53 = vld [vmem:[#allocation5 + $0x48] ss:$16 sps:$4 sm:$0xff]  }
 0x144   :  { %3543 = vmatprep.subr.bf16.mxu1 %v5243_v54  ;;  %v5283_v54 = vld [vmem:[#allocation5 + $0x248] ss:$16 sps:$4 sm:$0xff]  }
 0x146   :  { %3503 = vmatpush2.bf16.msra.mxu0 %v5238_v55  ;;  %v5288_v55 = vld [vmem:[#allocation5 + $0x2c] ss:$16 sps:$4 sm:$0xff]  }
 0x147   :  { %3544 = vmatpush2.bf16.msra.mxu1 %v5241_v56  ;;  %3504 = vmatprep.subr.bf16.mxu0 %v5246_v58  ;;  %v5291_v56 = vld [vmem:[#allocation5 + $0x22c] ss:$16 sps:$4 sm:$0xff]   ;;  %v5286_v58 = vld [vmem:[#allocation5 + $0x28] ss:$16 sps:$4 sm:$0xff]  }
 0x148   :  { %3545 = vmatprep.subr.bf16.mxu1 %v5249_v59  ;;  %v5289_v59 = vld [vmem:[#allocation5 + $0x228] ss:$16 sps:$4 sm:$0xff]  }
 0x14a   :  { %3505 = vmatpush2.bf16.msra.mxu0 %v5244_v60  ;;  %v5294_v60 = vld [vmem:[#allocation5 + $0xc] ss:$16 sps:$4 sm:$0xff]  }
 0x14b   :  { %3546 = vmatpush2.bf16.msra.mxu1 %v5247_v61  ;;  %3556 = vmatprep.subr.bf16.mxu0 %v5252_v2  ;;  %v5297_v61 = vld [vmem:[#allocation5 + $0x20c] ss:$16 sps:$4 sm:$0xff]   ;;  %v5298_v2 = vld [vmem:[#allocation5 + $0x1e8] ss:$16 sps:$4 sm:$0xff]  }
 0x14c   :  { %3597 = vmatprep.subr.bf16.mxu1 %v5255_v3  ;;  %v5301_v3 = vld [vmem:[#allocation5 + $0x3e8] ss:$16 sps:$4 sm:$0xff]  }
 0x14d   :  { %v3262_v15 = vpop.f32.mrf.mxu0  ;;  %3507 = vmatmul.mubr.bf16.vlgmr.msra.gmra.mxu0 %v5913_v5 }
 0x14e   :  { %v3303_v16 = vpop.f32.mrf.mxu1  ;;  %3548 = vmatmul.mubr.bf16.vlgmr.msra.gmra.mxu1 %v5915_v6  ;;  %v3263_v18 = vadd.f32 %v3262_v15, %v651_v10  ;;  %3557 = vmatpush1.bf16.msra.mxu0 %v5250_v7  ;;  %v5309_v7 = vld [vmem:[#allocation5 + $0x3cc] ss:$16 sps:$4 sm:$0xff]   ;;  %v5304_v10 = vld [vmem:[#allocation5 + $0x1c8] ss:$16 sps:$4 sm:$0xff]  }
 0x14f   :  { %3598 = vmatpush1.bf16.msra.mxu1 %v5253_v11  ;;  %v3264_v22 = vpop.f32.mrf.mxu0  ;;  %3558 = vmatprep.subr.bf16.mxu0 %v5258_v12  ;;  %v5307_v11 = vld [vmem:[#allocation5 + $0x3c8] ss:$16 sps:$4 sm:$0xff]   ;;  %v5312_v12 = vld [vmem:[#allocation5 + $0x1ac] ss:$16 sps:$4 sm:$0xff]  }
 0x150   :  { %v3305_v23 = vpop.f32.mrf.mxu1  ;;  %3599 = vmatprep.subr.bf16.mxu1 %v5261_v13  ;;  %v5919_v26 = vadd.f32 %v3303_v16, %v3263_v18  ;;  %v3265_v27 = vadd.f32 %v3264_v22, %v655_v14  ;;  %3588 = vmatprep.mubr.bf16.mxu0 %v5867_v49  ;;  %v5271_v49 = vld [vmem:[#allocation5 + $0x288] ss:$16 sps:$4 sm:$0xff]   ;;  %v5315_v13 = vld [vmem:[#allocation5 + $0x3ac] ss:$16 sps:$4 sm:$0xff]  }
 0x151   :  { %3629 = vmatprep.mubr.bf16.mxu1 %v5869_v52  ;;  %v3266_v28 = vpop.f32.mrf.mxu0  ;;  %v5276_v52 = vld [vmem:[#allocation5 + $0x6c] ss:$16 sps:$4 sm:$0xff]   ;;  %v5310_v14 = vld [vmem:[#allocation5 + $0x1a8] ss:$16 sps:$4 sm:$0xff]  }
 0x152   :  { %v3307_v30 = vpop.f32.mrf.mxu1  ;;  %v5923_v33 = vadd.f32 %v3305_v23, %v3265_v27  ;;  %3559 = vmatpush1.bf16.msra.mxu0 %v5256_v17  ;;  %v5313_v15 = vld [vmem:[#allocation5 + $0x3a8] ss:$16 sps:$4 sm:$0xff]   ;;  %v5318_v16 = vld [vmem:[#allocation5 + $0x18c] ss:$16 sps:$4 sm:$0xff]  }
 0x153   :  { %3600 = vmatpush1.bf16.msra.mxu1 %v5259_v19  ;;  %v3267_v35 = vpop.f32.mrf.mxu0  ;;  %3560 = vmatprep.subr.bf16.mxu0 %v5264_v24  ;;  %v5321_v17 = vld [vmem:[#allocation5 + $0x38c] ss:$16 sps:$4 sm:$0xff]   ;;  %v5316_v18 = vld [vmem:[#allocation5 + $0x188] ss:$16 sps:$4 sm:$0xff]  }
 0x154   :  { %v3308_v36 = vpop.f32.mrf.mxu1  ;;  %3601 = vmatprep.subr.bf16.mxu1 %v5267_v25  ;;  %v5319_v19 = vld [vmem:[#allocation5 + $0x388] ss:$16 sps:$4 sm:$0xff]   ;;  %v5324_v22 = vld [vmem:[#allocation5 + $0x16c] ss:$16 sps:$4 sm:$0xff]  }
 0x155   :  { %v5327_v23 = vld [vmem:[#allocation5 + $0x36c] ss:$16 sps:$4 sm:$0xff]   ;;  %v5322_v24 = vld [vmem:[#allocation5 + $0x168] ss:$16 sps:$4 sm:$0xff]  }
 0x156   :  { %3561 = vmatpush1.bf16.msra.mxu0 %v5262_v31  ;;  %v5325_v25 = vld [vmem:[#allocation5 + $0x368] ss:$16 sps:$4 sm:$0xff]   ;;  %v5330_v27 = vld [vmem:[#allocation5 + $0x14c] ss:$16 sps:$4 sm:$0xff]  }
 0x157   :  { %3602 = vmatpush1.bf16.msra.mxu1 %v5265_v34  ;;  %3562 = vmatprep.subr.bf16.mxu0 %v5270_v38  ;;  %v5333_v28 = vld [vmem:[#allocation5 + $0x34c] ss:$16 sps:$4 sm:$0xff]   ;;  %v5328_v30 = vld [vmem:[#allocation5 + $0x148] ss:$16 sps:$4 sm:$0xff]  }
 0x158   :  { %3603 = vmatprep.subr.bf16.mxu1 %v5273_v39  ;;  %v5331_v31 = vld [vmem:[#allocation5 + $0x348] ss:$16 sps:$4 sm:$0xff]   ;;  %v5336_v34 = vld [vmem:[#allocation5 + $0x12c] ss:$16 sps:$4 sm:$0xff]  }
 0x159   :  { %v5339_v35 = vld [vmem:[#allocation5 + $0x32c] ss:$16 sps:$4 sm:$0xff]   ;;  %v5334_v36 = vld [vmem:[#allocation5 + $0x128] ss:$16 sps:$4 sm:$0xff]  }
 0x15a   :  { %3563 = vmatpush1.bf16.msra.mxu0 %v5268_v41  ;;  %v5337_v38 = vld [vmem:[#allocation5 + $0x328] ss:$16 sps:$4 sm:$0xff]   ;;  %v5342_v39 = vld [vmem:[#allocation5 + $0x10c] ss:$16 sps:$4 sm:$0xff]  }
 0x15b   :  { %3604 = vmatpush1.bf16.msra.mxu1 %v5271_v49  ;;  %3564 = vmatprep.subr.bf16.mxu0 %v5276_v52  ;;  %v5345_v41 = vld [vmem:[#allocation5 + $0x30c] ss:$16 sps:$4 sm:$0xff]   ;;  %v5340_v49 = vld [vmem:[#allocation5 + $0x108] ss:$16 sps:$4 sm:$0xff]  }
 0x15c   :  { %3605 = vmatprep.subr.bf16.mxu1 %v5279_v44  ;;  %v5343_v52 = vld [vmem:[#allocation5 + $0x308] ss:$16 sps:$4 sm:$0xff]   ;;  %v5348_v44 = vld [vmem:[#allocation5 + $0x4ec] ss:$16 sps:$4 sm:$0xff]  }
 0x15e   :  { %3565 = vmatpush1.bf16.msra.mxu0 %v5274_v45  ;;  %v5351_v45 = vld [vmem:[#allocation5 + $0x6ec] ss:$16 sps:$4 sm:$0xff]  }
 0x15f   :  { %3606 = vmatpush1.bf16.msra.mxu1 %v5277_v46  ;;  %3566 = vmatprep.subr.bf16.mxu0 %v5282_v47  ;;  %v5346_v46 = vld [vmem:[#allocation5 + $0x4e8] ss:$16 sps:$4 sm:$0xff]  }
 0x160   :  { %3607 = vmatprep.subr.bf16.mxu1 %v5285_v51  ;;  %v5349_v47 = vld [vmem:[#allocation5 + $0x6e8] ss:$16 sps:$4 sm:$0xff]   ;;  %v5354_v51 = vld [vmem:[#allocation5 + $0x4cc] ss:$16 sps:$4 sm:$0xff]  }
 0x162   :  { %3567 = vmatpush1.bf16.msra.mxu0 %v5280_v53  ;;  %v5357_v53 = vld [vmem:[#allocation5 + $0x6cc] ss:$16 sps:$4 sm:$0xff]  }
 0x163   :  { %3608 = vmatpush1.bf16.msra.mxu1 %v5283_v54  ;;  %3568 = vmatprep.subr.bf16.mxu0 %v5288_v55  ;;  %v5352_v54 = vld [vmem:[#allocation5 + $0x4c8] ss:$16 sps:$4 sm:$0xff]  }
 0x164   :  { %3609 = vmatprep.subr.bf16.mxu1 %v5291_v56  ;;  %v5355_v55 = vld [vmem:[#allocation5 + $0x6c8] ss:$16 sps:$4 sm:$0xff]  }
 0x166   :  { %3569 = vmatpush1.bf16.msra.mxu0 %v5286_v58 }
 0x167   :  { %3610 = vmatpush1.bf16.msra.mxu1 %v5289_v59  ;;  %3570 = vmatprep.subr.bf16.mxu0 %v5294_v60 }
 0x168   :  { %3611 = vmatprep.subr.bf16.mxu1 %v5297_v61 }
 0x16a   :  { %3571 = vmatpush1.bf16.msra.mxu0 %v5292_v62  ;;  %v5360_v62 = vld [vmem:[#allocation5 + $0x4ac] ss:$16 sps:$4 sm:$0xff]  }
 0x16b   :  { %3612 = vmatpush1.bf16.msra.mxu1 %v5295_v63  ;;  %3572 = vmatprep.subr.bf16.mxu0 %v5300_v0  ;;  %v5363_v63 = vld [vmem:[#allocation5 + $0x6ac] ss:$16 sps:$4 sm:$0xff]  }
 0x16c   :  { %3613 = vmatprep.subr.bf16.mxu1 %v5303_v1 }
 0x16e   :  { %3573 = vmatpush2.bf16.msra.mxu0 %v5298_v2  ;;  %v5358_v2 = vld [vmem:[#allocation5 + $0x4a8] ss:$16 sps:$4 sm:$0xff]  }
 0x16f   :  { %3614 = vmatpush2.bf16.msra.mxu1 %v5301_v3  ;;  %3574 = vmatprep.subr.bf16.mxu0 %v5306_v4  ;;  %v5361_v3 = vld [vmem:[#allocation5 + $0x6a8] ss:$16 sps:$4 sm:$0xff]  }
 0x170   :  { %3615 = vmatprep.subr.bf16.mxu1 %v5309_v7 }
 0x172   :  { %3575 = vmatpush2.bf16.msra.mxu0 %v5304_v10  ;;  %v5366_v10 = vld [vmem:[#allocation5 + $0x48c] ss:$16 sps:$4 sm:$0xff]  }
 0x173   :  { %3616 = vmatpush2.bf16.msra.mxu1 %v5307_v11  ;;  %3576 = vmatprep.subr.bf16.mxu0 %v5312_v12  ;;  %v5369_v11 = vld [vmem:[#allocation5 + $0x68c] ss:$16 sps:$4 sm:$0xff]   ;;  %v5367_v12 = vld [vmem:[#allocation5 + $0x688] ss:$16 sps:$4 sm:$0xff]  }
 0x174   :  { %3617 = vmatprep.subr.bf16.mxu1 %v5315_v13  ;;  %v5370_v13 = vld [vmem:[#allocation5 + $0x468] ss:$16 sps:$4 sm:$0xff]  }
 0x176   :  { %3577 = vmatpush2.bf16.msra.mxu0 %v5310_v14  ;;  %v5373_v14 = vld [vmem:[#allocation5 + $0x668] ss:$16 sps:$4 sm:$0xff]  }
 0x177   :  { %3618 = vmatpush2.bf16.msra.mxu1 %v5313_v15  ;;  %3578 = vmatprep.subr.bf16.mxu0 %v5318_v16  ;;  %v5378_v15 = vld [vmem:[#allocation5 + $0x44c] ss:$16 sps:$4 sm:$0xff]  }
 0x178   :  { %3619 = vmatprep.subr.bf16.mxu1 %v5321_v17  ;;  %v5381_v16 = vld [vmem:[#allocation5 + $0x64c] ss:$16 sps:$4 sm:$0xff]   ;;  %v5376_v17 = vld [vmem:[#allocation5 + $0x448] ss:$16 sps:$4 sm:$0xff]  }
 0x17a   :  { %3579 = vmatpush2.bf16.msra.mxu0 %v5316_v18  ;;  %v5379_v18 = vld [vmem:[#allocation5 + $0x648] ss:$16 sps:$4 sm:$0xff]  }
 0x17b   :  { %3620 = vmatpush2.bf16.msra.mxu1 %v5319_v19  ;;  %3580 = vmatprep.subr.bf16.mxu0 %v5324_v22  ;;  %v5384_v19 = vld [vmem:[#allocation5 + $0x42c] ss:$16 sps:$4 sm:$0xff]  }
 0x17c   :  { %3621 = vmatprep.subr.bf16.mxu1 %v5327_v23  ;;  %v5387_v22 = vld [vmem:[#allocation5 + $0x62c] ss:$16 sps:$4 sm:$0xff]   ;;  %v5382_v23 = vld [vmem:[#allocation5 + $0x428] ss:$16 sps:$4 sm:$0xff]  }
 0x17e   :  { %3581 = vmatpush2.bf16.msra.mxu0 %v5322_v24  ;;  %v5385_v24 = vld [vmem:[#allocation5 + $0x628] ss:$16 sps:$4 sm:$0xff]  }
 0x17f   :  { %3622 = vmatpush2.bf16.msra.mxu1 %v5325_v25  ;;  %3582 = vmatprep.subr.bf16.mxu0 %v5330_v27  ;;  %v5390_v25 = vld [vmem:[#allocation5 + $0x40c] ss:$16 sps:$4 sm:$0xff]  }
 0x180   :  { %3623 = vmatprep.subr.bf16.mxu1 %v5333_v28  ;;  %v5393_v27 = vld [vmem:[#allocation5 + $0x60c] ss:$16 sps:$4 sm:$0xff]   ;;  %v5388_v28 = vld [vmem:[#allocation5 + $0x408] ss:$16 sps:$4 sm:$0xff]  }
 0x182   :  { %3583 = vmatpush2.bf16.msra.mxu0 %v5328_v30  ;;  %v5391_v30 = vld [vmem:[#allocation5 + $0x608] ss:$16 sps:$4 sm:$0xff]  }
 0x183   :  { %3624 = vmatpush2.bf16.msra.mxu1 %v5331_v31  ;;  %3584 = vmatprep.subr.bf16.mxu0 %v5336_v34  ;;  %v5396_v31 = vld [vmem:[#allocation5 + $0x5ec] ss:$16 sps:$4 sm:$0xff]  }
 0x184   :  { %3625 = vmatprep.subr.bf16.mxu1 %v5339_v35  ;;  %v5399_v34 = vld [vmem:[#allocation5 + $0x7ec] ss:$16 sps:$4 sm:$0xff]   ;;  %v5394_v35 = vld [vmem:[#allocation5 + $0x5e8] ss:$16 sps:$4 sm:$0xff]  }
 0x186   :  { %3585 = vmatpush2.bf16.msra.mxu0 %v5334_v36  ;;  %v5397_v36 = vld [vmem:[#allocation5 + $0x7e8] ss:$16 sps:$4 sm:$0xff]  }
 0x187   :  { %3626 = vmatpush2.bf16.msra.mxu1 %v5337_v38  ;;  %3586 = vmatprep.subr.bf16.mxu0 %v5342_v39  ;;  %v5402_v38 = vld [vmem:[#allocation5 + $0x5cc] ss:$16 sps:$4 sm:$0xff]  }
 0x188   :  { %3627 = vmatprep.subr.bf16.mxu1 %v5345_v41  ;;  %v5405_v39 = vld [vmem:[#allocation5 + $0x7cc] ss:$16 sps:$4 sm:$0xff]   ;;  %v5400_v41 = vld [vmem:[#allocation5 + $0x5c8] ss:$16 sps:$4 sm:$0xff]  }
 0x18a   :  { %3587 = vmatpush2.bf16.msra.mxu0 %v5340_v49  ;;  %v5403_v49 = vld [vmem:[#allocation5 + $0x7c8] ss:$16 sps:$4 sm:$0xff]  }
 0x18b   :  { %3628 = vmatpush2.bf16.msra.mxu1 %v5343_v52  ;;  %3638 = vmatprep.subr.bf16.mxu0 %v5348_v44  ;;  %v5408_v52 = vld [vmem:[#allocation5 + $0x5ac] ss:$16 sps:$4 sm:$0xff]  }
 0x18c   :  { %3679 = vmatprep.subr.bf16.mxu1 %v5351_v45  ;;  %v5411_v44 = vld [vmem:[#allocation5 + $0x7ac] ss:$16 sps:$4 sm:$0xff]   ;;  %v5406_v45 = vld [vmem:[#allocation5 + $0x5a8] ss:$16 sps:$4 sm:$0xff]  }
 0x18d   :  { %v3344_v56 = vpop.f32.mrf.mxu0  ;;  %3589 = vmatmul.mubr.bf16.vlgmr.msra.gmra.mxu0 %v5873_v8 }
 0x18e   :  { %v3385_v58 = vpop.f32.mrf.mxu1  ;;  %3630 = vmatmul.mubr.bf16.vlgmr.msra.gmra.mxu1 %v5875_v9  ;;  %v3345_v59 = vadd.f32 %v3344_v56, %v5919_v26  ;;  %3639 = vmatpush1.bf16.msra.mxu0 %v5346_v46  ;;  %v5409_v46 = vld [vmem:[#allocation5 + $0x7a8] ss:$16 sps:$4 sm:$0xff]   ;;  %v5423_v56 = vld [vmem:[#allocation5 + $0x76c] ss:$16 sps:$4 sm:$0xff]  }
 0x18f   :  { %3680 = vmatpush1.bf16.msra.mxu1 %v5349_v47  ;;  %v3346_v60 = vpop.f32.mrf.mxu0  ;;  %3640 = vmatprep.subr.bf16.mxu0 %v5354_v51  ;;  %v5414_v47 = vld [vmem:[#allocation5 + $0x58c] ss:$16 sps:$4 sm:$0xff]  }
 0x190   :  { %v3387_v61 = vpop.f32.mrf.mxu1  ;;  %3681 = vmatprep.subr.bf16.mxu1 %v5357_v53  ;;  %v5928_v0 = vadd.f32 %v3385_v58, %v3345_v59  ;;  %v3347_v1 = vadd.f32 %v3346_v60, %v5923_v33  ;;  %3670 = vmatprep.mubr.bf16.mxu0 %v5879_v37  ;;  %v5364_v33 = vld [vmem:[#allocation5 + $0x488] ss:$16 sps:$4 sm:$0xff]   ;;  %v5372_v37 = vld [vmem:[#allocation5 + $0x46c] ss:$16 sps:$4 sm:$0xff]  }
 0x191   :  { %3711 = vmatprep.mubr.bf16.mxu1 %v5881_v40  ;;  %v3348_v8 = vpop.f32.mrf.mxu0  ;;  %v5375_v40 = vld [vmem:[#allocation5 + $0x66c] ss:$16 sps:$4 sm:$0xff]   ;;  %v5412_v53 = vld [vmem:[#allocation5 + $0x588] ss:$16 sps:$4 sm:$0xff]  }
 0x192   :  { %v3389_v9 = vpop.f32.mrf.mxu1  ;;  %v5933_v26 = vadd.f32 %v3387_v61, %v3347_v1  ;;  %3641 = vmatpush1.bf16.msra.mxu0 %v5352_v54  ;;  %v5417_v51 = vld [vmem:[#allocation5 + $0x78c] ss:$16 sps:$4 sm:$0xff]   ;;  %v5415_v54 = vld [vmem:[#allocation5 + $0x788] ss:$16 sps:$4 sm:$0xff]  }
 0x193   :  { %3682 = vmatpush1.bf16.msra.mxu1 %v5355_v55  ;;  %v3349_v4 = vpop.f32.mrf.mxu0  ;;  %3642 = vmatprep.subr.bf16.mxu0 %v5360_v62  ;;  %v5420_v55 = vld [vmem:[#allocation5 + $0x56c] ss:$16 sps:$4 sm:$0xff]   ;;  %v5418_v58 = vld [vmem:[#allocation5 + $0x568] ss:$16 sps:$4 sm:$0xff]  }
 0x194   :  { %v3390_v7 = vpop.f32.mrf.mxu1  ;;  %3683 = vmatprep.subr.bf16.mxu1 %v5363_v63  ;;  %v5421_v59 = vld [vmem:[#allocation5 + $0x768] ss:$16 sps:$4 sm:$0xff]   ;;  %v5426_v60 = vld [vmem:[#allocation5 + $0x54c] ss:$16 sps:$4 sm:$0xff]  }
 0x195   :  { %v5429_v61 = vld [vmem:[#allocation5 + $0x74c] ss:$16 sps:$4 sm:$0xff]   ;;  %v5424_v62 = vld [vmem:[#allocation5 + $0x548] ss:$16 sps:$4 sm:$0xff]  }
 0x196   :  { %3643 = vmatpush1.bf16.msra.mxu0 %v5358_v2  ;;  %v5427_v63 = vld [vmem:[#allocation5 + $0x748] ss:$16 sps:$4 sm:$0xff]   ;;  %v5432_v1 = vld [vmem:[#allocation5 + $0x52c] ss:$16 sps:$4 sm:$0xff]  }
 0x197   :  { %3684 = vmatpush1.bf16.msra.mxu1 %v5361_v3  ;;  %3644 = vmatprep.subr.bf16.mxu0 %v5366_v10  ;;  %v5435_v2 = vld [vmem:[#allocation5 + $0x72c] ss:$16 sps:$4 sm:$0xff]   ;;  %v5430_v3 = vld [vmem:[#allocation5 + $0x528] ss:$16 sps:$4 sm:$0xff]  }
 0x198   :  { %3685 = vmatprep.subr.bf16.mxu1 %v5369_v11  ;;  %v5433_v8 = vld [vmem:[#allocation5 + $0x728] ss:$16 sps:$4 sm:$0xff]   ;;  %v5438_v9 = vld [vmem:[#allocation5 + $0x50c] ss:$16 sps:$4 sm:$0xff]  }
 0x199   :  { %v5441_v4 = vld [vmem:[#allocation5 + $0x70c] ss:$16 sps:$4 sm:$0xff]   ;;  %v5436_v7 = vld [vmem:[#allocation5 + $0x508] ss:$16 sps:$4 sm:$0xff]  }
 0x19a   :  { %3645 = vmatpush1.bf16.msra.mxu0 %v5364_v33  ;;  %v5439_v10 = vld [vmem:[#allocation5 + $0x708] ss:$16 sps:$4 sm:$0xff]   ;;  %v5444_v11 = vld [vmem:[#allocation5 + $0x8ec] ss:$16 sps:$4 sm:$0xff]  }
 0x19b   :  { %3686 = vmatpush1.bf16.msra.mxu1 %v5367_v12  ;;  %3646 = vmatprep.subr.bf16.mxu0 %v5372_v37  ;;  %v5447_v33 = vld [vmem:[#allocation5 + $0xaec] ss:$16 sps:$4 sm:$0xff]   ;;  %v5442_v12 = vld [vmem:[#allocation5 + $0x8e8] ss:$16 sps:$4 sm:$0xff]  }
 0x19c   :  { %3687 = vmatprep.subr.bf16.mxu1 %v5375_v40  ;;  %v5445_v37 = vld [vmem:[#allocation5 + $0xae8] ss:$16 sps:$4 sm:$0xff]   ;;  %v5450_v40 = vld [vmem:[#allocation5 + $0x8cc] ss:$16 sps:$4 sm:$0xff]  }
 0x19e   :  { %3647 = vmatpush1.bf16.msra.mxu0 %v5370_v13  ;;  %v5453_v13 = vld [vmem:[#allocation5 + $0xacc] ss:$16 sps:$4 sm:$0xff]  }
 0x19f   :  { %3688 = vmatpush1.bf16.msra.mxu1 %v5373_v14  ;;  %3648 = vmatprep.subr.bf16.mxu0 %v5378_v15 }
 0x1a0   :  { %3689 = vmatprep.subr.bf16.mxu1 %v5381_v16 }
 0x1a2   :  { %3649 = vmatpush1.bf16.msra.mxu0 %v5376_v17  ;;  %v5448_v17 = vld [vmem:[#allocation5 + $0x8c8] ss:$16 sps:$4 sm:$0xff]  }
 0x1a3   :  { %3690 = vmatpush1.bf16.msra.mxu1 %v5379_v18  ;;  %3650 = vmatprep.subr.bf16.mxu0 %v5384_v19  ;;  %v5451_v18 = vld [vmem:[#allocation5 + $0xac8] ss:$16 sps:$4 sm:$0xff]  }
 0x1a4   :  { %3691 = vmatprep.subr.bf16.mxu1 %v5387_v22 }
 0x1a6   :  { %3651 = vmatpush1.bf16.msra.mxu0 %v5382_v23  ;;  %v5456_v23 = vld [vmem:[#allocation5 + $0x8ac] ss:$16 sps:$4 sm:$0xff]  }
 0x1a7   :  { %3692 = vmatpush1.bf16.msra.mxu1 %v5385_v24  ;;  %3652 = vmatprep.subr.bf16.mxu0 %v5390_v25  ;;  %v5459_v24 = vld [vmem:[#allocation5 + $0xaac] ss:$16 sps:$4 sm:$0xff]  }
 0x1a8   :  { %3693 = vmatprep.subr.bf16.mxu1 %v5393_v27 }
 0x1aa   :  { %3653 = vmatpush1.bf16.msra.mxu0 %v5388_v28  ;;  %v5454_v28 = vld [vmem:[#allocation5 + $0x8a8] ss:$16 sps:$4 sm:$0xff]  }
 0x1ab   :  { %3694 = vmatpush1.bf16.msra.mxu1 %v5391_v30  ;;  %3654 = vmatprep.subr.bf16.mxu0 %v5396_v31  ;;  %v5457_v30 = vld [vmem:[#allocation5 + $0xaa8] ss:$16 sps:$4 sm:$0xff]  }
 0x1ac   :  { %3695 = vmatprep.subr.bf16.mxu1 %v5399_v34 }
 0x1ae   :  { %3655 = vmatpush2.bf16.msra.mxu0 %v5394_v35  ;;  %v5462_v35 = vld [vmem:[#allocation5 + $0x88c] ss:$16 sps:$4 sm:$0xff]  }
 0x1af   :  { %3696 = vmatpush2.bf16.msra.mxu1 %v5397_v36  ;;  %3656 = vmatprep.subr.bf16.mxu0 %v5402_v38  ;;  %v5465_v36 = vld [vmem:[#allocation5 + $0xa8c] ss:$16 sps:$4 sm:$0xff]  }
 0x1b0   :  { %3697 = vmatprep.subr.bf16.mxu1 %v5405_v39  ;;  %v5471_v38 = vld [vmem:[#allocation5 + $0xa6c] ss:$16 sps:$4 sm:$0xff]   ;;  %v5466_v39 = vld [vmem:[#allocation5 + $0x868] ss:$16 sps:$4 sm:$0xff]  }
 0x1b2   :  { %3657 = vmatpush2.bf16.msra.mxu0 %v5400_v41  ;;  %v5469_v41 = vld [vmem:[#allocation5 + $0xa68] ss:$16 sps:$4 sm:$0xff]  }
 0x1b3   :  { %3698 = vmatpush2.bf16.msra.mxu1 %v5403_v49  ;;  %3658 = vmatprep.subr.bf16.mxu0 %v5408_v52  ;;  %v5474_v49 = vld [vmem:[#allocation5 + $0x84c] ss:$16 sps:$4 sm:$0xff]  }
 0x1b4   :  { %3699 = vmatprep.subr.bf16.mxu1 %v5411_v44  ;;  %v5477_v52 = vld [vmem:[#allocation5 + $0xa4c] ss:$16 sps:$4 sm:$0xff]   ;;  %v5472_v44 = vld [vmem:[#allocation5 + $0x848] ss:$16 sps:$4 sm:$0xff]  }
 0x1b6   :  { %3659 = vmatpush2.bf16.msra.mxu0 %v5406_v45  ;;  %v5475_v45 = vld [vmem:[#allocation5 + $0xa48] ss:$16 sps:$4 sm:$0xff]  }
 0x1b7   :  { %3700 = vmatpush2.bf16.msra.mxu1 %v5409_v46  ;;  %3660 = vmatprep.subr.bf16.mxu0 %v5414_v47  ;;  %v5480_v46 = vld [vmem:[#allocation5 + $0x82c] ss:$16 sps:$4 sm:$0xff]  }
 0x1b8   :  { %3701 = vmatprep.subr.bf16.mxu1 %v5417_v51  ;;  %v5483_v47 = vld [vmem:[#allocation5 + $0xa2c] ss:$16 sps:$4 sm:$0xff]   ;;  %v5478_v51 = vld [vmem:[#allocation5 + $0x828] ss:$16 sps:$4 sm:$0xff]  }
 0x1ba   :  { %3661 = vmatpush2.bf16.msra.mxu0 %v5412_v53  ;;  %v5481_v53 = vld [vmem:[#allocation5 + $0xa28] ss:$16 sps:$4 sm:$0xff]  }
 0x1bb   :  { %3702 = vmatpush2.bf16.msra.mxu1 %v5415_v54  ;;  %3662 = vmatprep.subr.bf16.mxu0 %v5420_v55  ;;  %v5486_v54 = vld [vmem:[#allocation5 + $0x80c] ss:$16 sps:$4 sm:$0xff]  }
 0x1bc   :  { %3703 = vmatprep.subr.bf16.mxu1 %v5423_v56  ;;  %v5489_v55 = vld [vmem:[#allocation5 + $0xa0c] ss:$16 sps:$4 sm:$0xff]   ;;  %v5484_v56 = vld [vmem:[#allocation5 + $0x808] ss:$16 sps:$4 sm:$0xff]  }
 0x1be   :  { %3663 = vmatpush2.bf16.msra.mxu0 %v5418_v58  ;;  %v5487_v58 = vld [vmem:[#allocation5 + $0xa08] ss:$16 sps:$4 sm:$0xff]  }
 0x1bf   :  { %3704 = vmatpush2.bf16.msra.mxu1 %v5421_v59  ;;  %3664 = vmatprep.subr.bf16.mxu0 %v5426_v60  ;;  %v5492_v59 = vld [vmem:[#allocation5 + $0x9ec] ss:$16 sps:$4 sm:$0xff]  }
 0x1c0   :  { %3705 = vmatprep.subr.bf16.mxu1 %v5429_v61  ;;  %v5495_v60 = vld [vmem:[#allocation5 + $0xbec] ss:$16 sps:$4 sm:$0xff]   ;;  %v5490_v61 = vld [vmem:[#allocation5 + $0x9e8] ss:$16 sps:$4 sm:$0xff]  }
 0x1c2   :  { %3665 = vmatpush2.bf16.msra.mxu0 %v5424_v62  ;;  %v5493_v62 = vld [vmem:[#allocation5 + $0xbe8] ss:$16 sps:$4 sm:$0xff]  }
 0x1c3   :  { %3706 = vmatpush2.bf16.msra.mxu1 %v5427_v63  ;;  %3666 = vmatprep.subr.bf16.mxu0 %v5432_v1  ;;  %v5498_v63 = vld [vmem:[#allocation5 + $0x9cc] ss:$16 sps:$4 sm:$0xff]  }
 0x1c4   :  { %3707 = vmatprep.subr.bf16.mxu1 %v5435_v2  ;;  %v5501_v1 = vld [vmem:[#allocation5 + $0xbcc] ss:$16 sps:$4 sm:$0xff]   ;;  %v5496_v2 = vld [vmem:[#allocation5 + $0x9c8] ss:$16 sps:$4 sm:$0xff]  }
 0x1c6   :  { %3667 = vmatpush2.bf16.msra.mxu0 %v5430_v3  ;;  %v5499_v3 = vld [vmem:[#allocation5 + $0xbc8] ss:$16 sps:$4 sm:$0xff]  }
 0x1c7   :  { %3708 = vmatpush2.bf16.msra.mxu1 %v5433_v8  ;;  %3668 = vmatprep.subr.bf16.mxu0 %v5438_v9  ;;  %v5504_v8 = vld [vmem:[#allocation5 + $0x9ac] ss:$16 sps:$4 sm:$0xff]  }
 0x1c8   :  { %3709 = vmatprep.subr.bf16.mxu1 %v5441_v4  ;;  %v5507_v9 = vld [vmem:[#allocation5 + $0xbac] ss:$16 sps:$4 sm:$0xff]   ;;  %v5502_v4 = vld [vmem:[#allocation5 + $0x9a8] ss:$16 sps:$4 sm:$0xff]  }
 0x1ca   :  { %3669 = vmatpush2.bf16.msra.mxu0 %v5436_v7  ;;  %v5505_v7 = vld [vmem:[#allocation5 + $0xba8] ss:$16 sps:$4 sm:$0xff]  }
 0x1cb   :  { %3710 = vmatpush2.bf16.msra.mxu1 %v5439_v10  ;;  %3720 = vmatprep.subr.bf16.mxu0 %v5444_v11  ;;  %v5510_v10 = vld [vmem:[#allocation5 + $0x98c] ss:$16 sps:$4 sm:$0xff]  }
 0x1cc   :  { %3761 = vmatprep.subr.bf16.mxu1 %v5447_v33  ;;  %v5513_v11 = vld [vmem:[#allocation5 + $0xb8c] ss:$16 sps:$4 sm:$0xff]   ;;  %v5508_v33 = vld [vmem:[#allocation5 + $0x988] ss:$16 sps:$4 sm:$0xff]  }
 0x1cd   :  { %v3426_v14 = vpop.f32.mrf.mxu0  ;;  %3671 = vmatmul.mubr.bf16.vlgmr.msra.gmra.mxu0 %v5885_v20 }
 0x1ce   :  { %v3467_v15 = vpop.f32.mrf.mxu1  ;;  %3712 = vmatmul.mubr.bf16.vlgmr.msra.gmra.mxu1 %v5887_v21  ;;  %v3427_v16 = vadd.f32 %v3426_v14, %v5928_v0  ;;  %3721 = vmatpush1.bf16.msra.mxu0 %v5442_v12  ;;  %v5511_v12 = vld [vmem:[#allocation5 + $0xb88] ss:$16 sps:$4 sm:$0xff]  }
 0x1cf   :  { %3762 = vmatpush1.bf16.msra.mxu1 %v5445_v37  ;;  %v3428_v19 = vpop.f32.mrf.mxu0  ;;  %3722 = vmatprep.subr.bf16.mxu0 %v5450_v40  ;;  %v5516_v37 = vld [vmem:[#allocation5 + $0x96c] ss:$16 sps:$4 sm:$0xff]   ;;  %v5517_v14 = vld [vmem:[#allocation5 + $0xb68] ss:$16 sps:$4 sm:$0xff]  }
 0x1d0   :  { %v3469_v22 = vpop.f32.mrf.mxu1  ;;  %3763 = vmatprep.subr.bf16.mxu1 %v5453_v13  ;;  %v5938_v25 = vadd.f32 %v3467_v15, %v3427_v16  ;;  %v3429_v27 = vadd.f32 %v3428_v19, %v5933_v26  ;;  %3752 = vmatprep.mubr.bf16.mxu0 %v5891_v29  ;;  %v5460_v26 = vld [vmem:[#allocation5 + $0x888] ss:$16 sps:$4 sm:$0xff]   ;;  %v5519_v40 = vld [vmem:[#allocation5 + $0xb6c] ss:$16 sps:$4 sm:$0xff]  }
 0x1d1   :  { %3793 = vmatprep.mubr.bf16.mxu1 %v5893_v32  ;;  %v3430_v20 = vpop.f32.mrf.mxu0  ;;  %v5463_v29 = vld [vmem:[#allocation5 + $0xa88] ss:$16 sps:$4 sm:$0xff]   ;;  %v5468_v32 = vld [vmem:[#allocation5 + $0x86c] ss:$16 sps:$4 sm:$0xff]  }
 0x1d2   :  { %v3471_v21 = vpop.f32.mrf.mxu1  ;;  %v5943_v0 = vadd.f32 %v3469_v22, %v3429_v27  ;;  %3723 = vmatpush1.bf16.msra.mxu0 %v5448_v17  ;;  %v5514_v13 = vld [vmem:[#allocation5 + $0x968] ss:$16 sps:$4 sm:$0xff]   ;;  %v5522_v15 = vld [vmem:[#allocation5 + $0x94c] ss:$16 sps:$4 sm:$0xff]  }
 0x1d3   :  { %3764 = vmatpush1.bf16.msra.mxu1 %v5451_v18  ;;  %v3431_v31 = vpop.f32.mrf.mxu0  ;;  %3724 = vmatprep.subr.bf16.mxu0 %v5456_v23  ;;  %v5525_v16 = vld [vmem:[#allocation5 + $0xb4c] ss:$16 sps:$4 sm:$0xff]   ;;  %v5520_v17 = vld [vmem:[#allocation5 + $0x948] ss:$16 sps:$4 sm:$0xff]  }
 0x1d4   :  { %v3472_v34 = vpop.f32.mrf.mxu1  ;;  %3765 = vmatprep.subr.bf16.mxu1 %v5459_v24  ;;  %v5523_v18 = vld [vmem:[#allocation5 + $0xb48] ss:$16 sps:$4 sm:$0xff]   ;;  %v5528_v19 = vld [vmem:[#allocation5 + $0x92c] ss:$16 sps:$4 sm:$0xff]  }
 0x1d5   :  { %v5531_v22 = vld [vmem:[#allocation5 + $0xb2c] ss:$16 sps:$4 sm:$0xff]   ;;  %v5526_v23 = vld [vmem:[#allocation5 + $0x928] ss:$16 sps:$4 sm:$0xff]  }
 0x1d6   :  { %3725 = vmatpush1.bf16.msra.mxu0 %v5454_v28  ;;  %v5529_v24 = vld [vmem:[#allocation5 + $0xb28] ss:$16 sps:$4 sm:$0xff]   ;;  %v5534_v27 = vld [vmem:[#allocation5 + $0x90c] ss:$16 sps:$4 sm:$0xff]  }
 0x1d7   :  { %3766 = vmatpush1.bf16.msra.mxu1 %v5457_v30  ;;  %3726 = vmatprep.subr.bf16.mxu0 %v5462_v35  ;;  %v5537_v20 = vld [vmem:[#allocation5 + $0xb0c] ss:$16 sps:$4 sm:$0xff]   ;;  %v5532_v21 = vld [vmem:[#allocation5 + $0x908] ss:$16 sps:$4 sm:$0xff]  }
 0x1d8   :  { %3767 = vmatprep.subr.bf16.mxu1 %v5465_v36  ;;  %v5535_v28 = vld [vmem:[#allocation5 + $0xb08] ss:$16 sps:$4 sm:$0xff]   ;;  %v5540_v30 = vld [vmem:[#allocation5 + $0xcec] ss:$16 sps:$4 sm:$0xff]  }
 0x1d9   :  { %v5543_v31 = vld [vmem:[#allocation5 + $0xeec] ss:$16 sps:$4 sm:$0xff]   ;;  %v5538_v34 = vld [vmem:[#allocation5 + $0xce8] ss:$16 sps:$4 sm:$0xff]  }
 0x1da   :  { %3727 = vmatpush1.bf16.msra.mxu0 %v5460_v26  ;;  %v5541_v35 = vld [vmem:[#allocation5 + $0xee8] ss:$16 sps:$4 sm:$0xff]   ;;  %v5546_v36 = vld [vmem:[#allocation5 + $0xccc] ss:$16 sps:$4 sm:$0xff]  }
 0x1db   :  { %3768 = vmatpush1.bf16.msra.mxu1 %v5463_v29  ;;  %3728 = vmatprep.subr.bf16.mxu0 %v5468_v32  ;;  %v5549_v26 = vld [vmem:[#allocation5 + $0xecc] ss:$16 sps:$4 sm:$0xff]  }
 0x1dc   :  { %3769 = vmatprep.subr.bf16.mxu1 %v5471_v38 }
 0x1de   :  { %3729 = vmatpush1.bf16.msra.mxu0 %v5466_v39  ;;  %v5544_v39 = vld [vmem:[#allocation5 + $0xcc8] ss:$16 sps:$4 sm:$0xff]  }
 0x1df   :  { %3770 = vmatpush1.bf16.msra.mxu1 %v5469_v41  ;;  %3730 = vmatprep.subr.bf16.mxu0 %v5474_v49  ;;  %v5547_v41 = vld [vmem:[#allocation5 + $0xec8] ss:$16 sps:$4 sm:$0xff]  }
 0x1e0   :  { %3771 = vmatprep.subr.bf16.mxu1 %v5477_v52 }
 0x1e2   :  { %3731 = vmatpush1.bf16.msra.mxu0 %v5472_v44  ;;  %v5552_v44 = vld [vmem:[#allocation5 + $0xcac] ss:$16 sps:$4 sm:$0xff]  }
 0x1e3   :  { %3772 = vmatpush1.bf16.msra.mxu1 %v5475_v45  ;;  %3732 = vmatprep.subr.bf16.mxu0 %v5480_v46  ;;  %v5555_v45 = vld [vmem:[#allocation5 + $0xeac] ss:$16 sps:$4 sm:$0xff]  }
 0x1e4   :  { %3773 = vmatprep.subr.bf16.mxu1 %v5483_v47  ;;  %v5553_v47 = vld [vmem:[#allocation5 + $0xea8] ss:$16 sps:$4 sm:$0xff]  }
 0x1e6   :  { %3733 = vmatpush1.bf16.msra.mxu0 %v5478_v51 }
 0x1e7   :  { %3774 = vmatpush1.bf16.msra.mxu1 %v5481_v53  ;;  %3734 = vmatprep.subr.bf16.mxu0 %v5486_v54  ;;  %v5558_v54 = vld [vmem:[#allocation5 + $0xc8c] ss:$16 sps:$4 sm:$0xff]  }
 0x1e8   :  { %3775 = vmatprep.subr.bf16.mxu1 %v5489_v55  ;;  %v5561_v55 = vld [vmem:[#allocation5 + $0xe8c] ss:$16 sps:$4 sm:$0xff]  }
 0x1ea   :  { %3735 = vmatpush1.bf16.msra.mxu0 %v5484_v56  ;;  %v5556_v56 = vld [vmem:[#allocation5 + $0xc88] ss:$16 sps:$4 sm:$0xff]  }
 0x1eb   :  { %3776 = vmatpush1.bf16.msra.mxu1 %v5487_v58  ;;  %3736 = vmatprep.subr.bf16.mxu0 %v5492_v59  ;;  %v5559_v58 = vld [vmem:[#allocation5 + $0xe88] ss:$16 sps:$4 sm:$0xff]  }
 0x1ec   :  { %3777 = vmatprep.subr.bf16.mxu1 %v5495_v60  ;;  %v5562_v59 = vld [vmem:[#allocation5 + $0xc68] ss:$16 sps:$4 sm:$0xff]  }
 0x1ed   :  { %v5565_v60 = vld [vmem:[#allocation5 + $0xe68] ss:$16 sps:$4 sm:$0xff]  }
 0x1ee   :  { %3737 = vmatpush2.bf16.msra.mxu0 %v5490_v61  ;;  %v5570_v61 = vld [vmem:[#allocation5 + $0xc4c] ss:$16 sps:$4 sm:$0xff]  }
 0x1ef   :  { %3778 = vmatpush2.bf16.msra.mxu1 %v5493_v62  ;;  %3738 = vmatprep.subr.bf16.mxu0 %v5498_v63  ;;  %v5573_v62 = vld [vmem:[#allocation5 + $0xe4c] ss:$16 sps:$4 sm:$0xff]   ;;  %v5568_v63 = vld [vmem:[#allocation5 + $0xc48] ss:$16 sps:$4 sm:$0xff]  }
 0x1f0   :  { %3779 = vmatprep.subr.bf16.mxu1 %v5501_v1  ;;  %v5571_v1 = vld [vmem:[#allocation5 + $0xe48] ss:$16 sps:$4 sm:$0xff]  }
 0x1f2   :  { %3739 = vmatpush2.bf16.msra.mxu0 %v5496_v2  ;;  %v5576_v2 = vld [vmem:[#allocation5 + $0xc2c] ss:$16 sps:$4 sm:$0xff]  }
 0x1f3   :  { %3780 = vmatpush2.bf16.msra.mxu1 %v5499_v3  ;;  %3740 = vmatprep.subr.bf16.mxu0 %v5504_v8  ;;  %v5579_v3 = vld [vmem:[#allocation5 + $0xe2c] ss:$16 sps:$4 sm:$0xff]   ;;  %v5574_v8 = vld [vmem:[#allocation5 + $0xc28] ss:$16 sps:$4 sm:$0xff]  }
 0x1f4   :  { %3781 = vmatprep.subr.bf16.mxu1 %v5507_v9  ;;  %v5577_v9 = vld [vmem:[#allocation5 + $0xe28] ss:$16 sps:$4 sm:$0xff]  }
 0x1f6   :  { %3741 = vmatpush2.bf16.msra.mxu0 %v5502_v4  ;;  %v5582_v4 = vld [vmem:[#allocation5 + $0xc0c] ss:$16 sps:$4 sm:$0xff]  }
 0x1f7   :  { %3782 = vmatpush2.bf16.msra.mxu1 %v5505_v7  ;;  %3742 = vmatprep.subr.bf16.mxu0 %v5510_v10  ;;  %v5585_v7 = vld [vmem:[#allocation5 + $0xe0c] ss:$16 sps:$4 sm:$0xff]   ;;  %v5580_v10 = vld [vmem:[#allocation5 + $0xc08] ss:$16 sps:$4 sm:$0xff]  }
 0x1f8   :  { %3783 = vmatprep.subr.bf16.mxu1 %v5513_v11  ;;  %v5583_v11 = vld [vmem:[#allocation5 + $0xe08] ss:$16 sps:$4 sm:$0xff]  }
 0x1fa   :  { %3743 = vmatpush2.bf16.msra.mxu0 %v5508_v33  ;;  %v5588_v33 = vld [vmem:[#allocation5 + $0xdec] ss:$16 sps:$4 sm:$0xff]  }
 0x1fb   :  { %3784 = vmatpush2.bf16.msra.mxu1 %v5511_v12  ;;  %3744 = vmatprep.subr.bf16.mxu0 %v5516_v37  ;;  %v5591_v12 = vld [vmem:[#allocation5 + $0xfec] ss:$16 sps:$4 sm:$0xff]   ;;  %v5586_v37 = vld [vmem:[#allocation5 + $0xde8] ss:$16 sps:$4 sm:$0xff]  }
 0x1fc   :  { %3785 = vmatprep.subr.bf16.mxu1 %v5519_v40  ;;  %v5589_v40 = vld [vmem:[#allocation5 + $0xfe8] ss:$16 sps:$4 sm:$0xff]  }
 0x1fe   :  { %3745 = vmatpush2.bf16.msra.mxu0 %v5514_v13  ;;  %v5594_v13 = vld [vmem:[#allocation5 + $0xdcc] ss:$16 sps:$4 sm:$0xff]  }
 0x1ff   :  { %3786 = vmatpush2.bf16.msra.mxu1 %v5517_v14  ;;  %3746 = vmatprep.subr.bf16.mxu0 %v5522_v15  ;;  %v5597_v14 = vld [vmem:[#allocation5 + $0xfcc] ss:$16 sps:$4 sm:$0xff]   ;;  %v5592_v15 = vld [vmem:[#allocation5 + $0xdc8] ss:$16 sps:$4 sm:$0xff]  }
 0x200   :  { %3787 = vmatprep.subr.bf16.mxu1 %v5525_v16  ;;  %v5595_v16 = vld [vmem:[#allocation5 + $0xfc8] ss:$16 sps:$4 sm:$0xff]  }
 0x202   :  { %3747 = vmatpush2.bf16.msra.mxu0 %v5520_v17  ;;  %v5600_v17 = vld [vmem:[#allocation5 + $0xdac] ss:$16 sps:$4 sm:$0xff]  }
 0x203   :  { %3788 = vmatpush2.bf16.msra.mxu1 %v5523_v18  ;;  %3748 = vmatprep.subr.bf16.mxu0 %v5528_v19  ;;  %v5603_v18 = vld [vmem:[#allocation5 + $0xfac] ss:$16 sps:$4 sm:$0xff]   ;;  %v5598_v19 = vld [vmem:[#allocation5 + $0xda8] ss:$16 sps:$4 sm:$0xff]  }
 0x204   :  { %3789 = vmatprep.subr.bf16.mxu1 %v5531_v22  ;;  %v5601_v22 = vld [vmem:[#allocation5 + $0xfa8] ss:$16 sps:$4 sm:$0xff]  }
 0x206   :  { %3749 = vmatpush2.bf16.msra.mxu0 %v5526_v23  ;;  %v5606_v23 = vld [vmem:[#allocation5 + $0xd8c] ss:$16 sps:$4 sm:$0xff]  }
 0x207   :  { %3790 = vmatpush2.bf16.msra.mxu1 %v5529_v24  ;;  %3750 = vmatprep.subr.bf16.mxu0 %v5534_v27  ;;  %v5609_v24 = vld [vmem:[#allocation5 + $0xf8c] ss:$16 sps:$4 sm:$0xff]   ;;  %v5604_v27 = vld [vmem:[#allocation5 + $0xd88] ss:$16 sps:$4 sm:$0xff]  }
 0x208   :  { %3791 = vmatprep.subr.bf16.mxu1 %v5537_v20  ;;  %v5607_v20 = vld [vmem:[#allocation5 + $0xf88] ss:$16 sps:$4 sm:$0xff]  }
 0x20a   :  { %3751 = vmatpush2.bf16.msra.mxu0 %v5532_v21  ;;  %v5612_v21 = vld [vmem:[#allocation5 + $0xd6c] ss:$16 sps:$4 sm:$0xff]  }
 0x20b   :  { %3792 = vmatpush2.bf16.msra.mxu1 %v5535_v28  ;;  %3802 = vmatprep.subr.bf16.mxu0 %v5540_v30  ;;  %v5615_v28 = vld [vmem:[#allocation5 + $0xf6c] ss:$16 sps:$4 sm:$0xff]   ;;  %v5610_v30 = vld [vmem:[#allocation5 + $0xd68] ss:$16 sps:$4 sm:$0xff]  }
 0x20c   :  { %3843 = vmatprep.subr.bf16.mxu1 %v5543_v31  ;;  %v5613_v31 = vld [vmem:[#allocation5 + $0xf68] ss:$16 sps:$4 sm:$0xff]  }
 0x20d   :  { %v3508_v29 = vpop.f32.mrf.mxu0  ;;  %3753 = vmatmul.mubr.bf16.vlgmr.msra.gmra.mxu0 %v5897_v42 }
 0x20e   :  { %v3549_v32 = vpop.f32.mrf.mxu1  ;;  %3794 = vmatmul.mubr.bf16.vlgmr.msra.gmra.mxu1 %v5899_v43  ;;  %v3509_v38 = vadd.f32 %v3508_v29, %v5938_v25  ;;  %3803 = vmatpush1.bf16.msra.mxu0 %v5538_v34  ;;  %v5550_v25 = vld [vmem:[#allocation5 + $0xca8] ss:$16 sps:$4 sm:$0xff]   ;;  %v5618_v34 = vld [vmem:[#allocation5 + $0xd4c] ss:$16 sps:$4 sm:$0xff]  }
 0x20f   :  { %3844 = vmatpush1.bf16.msra.mxu1 %v5541_v35  ;;  %v5948_v49 = vpop.f32.mrf.mxu0  ;;  %3804 = vmatprep.subr.bf16.mxu0 %v5546_v36  ;;  %v5621_v35 = vld [vmem:[#allocation5 + $0xf4c] ss:$16 sps:$4 sm:$0xff]   ;;  %v5616_v36 = vld [vmem:[#allocation5 + $0xd48] ss:$16 sps:$4 sm:$0xff]  }
 0x210   :  { %v5950_v52 = vpop.f32.mrf.mxu1  ;;  %3845 = vmatprep.subr.bf16.mxu1 %v5549_v26  ;;  %v5952_v46 = vadd.f32 %v3549_v32, %v3509_v38  ;;  %3834 = vmatprep.mubr.bf16.mxu0 %v5901_v48  ;;  %v5564_v48 = vld [vmem:[#allocation5 + $0xc6c] ss:$16 sps:$4 sm:$0xff]   ;;  %v5619_v26 = vld [vmem:[#allocation5 + $0xf48] ss:$16 sps:$4 sm:$0xff]   ;;  %v3511_v38 = vadd.f32 %v5948_v49, %v5943_v0  ;;  %v662_v49 = vsub.s32 3, %v5909_v57 }
 0x211   :  { %3875 = vmatprep.mubr.bf16.mxu1 %v5903_v50  ;;  %v3512_v42 = vpop.f32.mrf.mxu0  ;;  %v5567_v50 = vld [vmem:[#allocation5 + $0xe6c] ss:$16 sps:$4 sm:$0xff]  }
 0x212   :  { %v3553_v43 = vpop.f32.mrf.mxu1  ;;  %3805 = vmatpush1.bf16.msra.mxu0 %v5544_v39  ;;  %v5624_v29 = vld [vmem:[#allocation5 + $0xd2c] ss:$16 sps:$4 sm:$0xff]   ;;  %v5622_v39 = vld [vmem:[#allocation5 + $0xd28] ss:$16 sps:$4 sm:$0xff]   ;;  %v3552_v42 = vadd.f32 %v5950_v52, %v3511_v38 }
 0x213   :  { %3846 = vmatpush1.bf16.msra.mxu1 %v5547_v41  ;;  %v3513_v51 = vpop.f32.mrf.mxu0  ;;  %3806 = vmatprep.subr.bf16.mxu0 %v5552_v44  ;;  %v5627_v32 = vld [vmem:[#allocation5 + $0xf2c] ss:$16 sps:$4 sm:$0xff]   ;;  %v5625_v41 = vld [vmem:[#allocation5 + $0xf28] ss:$16 sps:$4 sm:$0xff]  }
 0x214   :  { %v3554_v53 = vpop.f32.mrf.mxu1  ;;  %3847 = vmatprep.subr.bf16.mxu1 %v5555_v45  ;;  %v5630_v44 = vld [vmem:[#allocation5 + $0xd0c] ss:$16 sps:$4 sm:$0xff]   ;;  %v5628_v43 = vld [vmem:[#allocation5 + $0xd08] ss:$16 sps:$4 sm:$0xff]   ;;  %v3885_v0 = vmax.f32 %v3552_v42, 0.0 }
 0x215   :  { %v5633_v45 = vld [vmem:[#allocation5 + $0xf0c] ss:$16 sps:$4 sm:$0xff]   ;;  %v5670_v53 = vld [vmem:[#allocation7] sm:$0xf] }
 0x216   :  { %3807 = vmatpush1.bf16.msra.mxu0 %v5550_v25  ;;  %v5631_v25 = vld [vmem:[#allocation5 + $0xf08] ss:$16 sps:$4 sm:$0xff]   ;;  %v5634_v51 = vld [vmem:[#allocation8 + $0x78] sm:$0xff]   ;;  %v3889_v52 = vpack.c.bf16 %v3885_v0, %v3885_v0 }
 0x217   :  { %3848 = vmatpush1.bf16.msra.mxu1 %v5553_v47  ;;  %3808 = vmatprep.subr.bf16.mxu0 %v5558_v54  ;;  %v658_v47 = vsub.s32 2, %v5909_v57 }
 0x218   :  { %3849 = vmatprep.subr.bf16.mxu1 %v5561_v55  ;;  %v5635_v55 = vld [vmem:[#allocation8 + $0x38] sm:$0xff]  }
 0x219   :  { %v659_v54 = vrot.slane %v5670_v53, %v658_v47  ;;  %v5665_v47 = vld [vmem:[#allocation8 + $0x80] sm:$0xff]  }
 0x21a   :  { %3809 = vmatpush1.bf16.msra.mxu0 %v5556_v56  ;;  %v5636_v56 = vld [vmem:[#allocation8 + $0x70] sm:$0xff]  }
 0x21b   :  { %3850 = vmatpush1.bf16.msra.mxu1 %v5559_v58  ;;  %3810 = vmatprep.subr.bf16.mxu0 %v5564_v48  ;;  %v663_v58 = vrot.slane %v5670_v53, %v662_v49 }
 0x21c   :  { %3851 = vmatprep.subr.bf16.mxu1 %v5567_v50 }
 0x21e   :  { %3811 = vmatpush1.bf16.msra.mxu0 %v5562_v59 }
 0x21f   :  { %3852 = vmatpush1.bf16.msra.mxu1 %v5565_v60  ;;  %3812 = vmatprep.subr.bf16.mxu0 %v5570_v61  ;;  %v5637_v60 = vld [vmem:[#allocation8 + $0x30] sm:$0xff]  }
 0x220   :  { %3853 = vmatprep.subr.bf16.mxu1 %v5573_v62  ;;  %v5638_v62 = vld [vmem:[#allocation8 + $0x68] sm:$0xff]  }
 0x222   :  { %3813 = vmatpush1.bf16.msra.mxu0 %v5568_v63 }
 0x223   :  { %3854 = vmatpush1.bf16.msra.mxu1 %v5571_v1  ;;  %3814 = vmatprep.subr.bf16.mxu0 %v5576_v2 }
 0x224   :  { %3855 = vmatprep.subr.bf16.mxu1 %v5579_v3 }
 0x226   :  { %3815 = vmatpush1.bf16.msra.mxu0 %v5574_v8 }
 0x227   :  { %3856 = vmatpush1.bf16.msra.mxu1 %v5577_v9  ;;  %3816 = vmatprep.subr.bf16.mxu0 %v5582_v4  ;;  %v5639_v9 = vld [vmem:[#allocation8 + $0x28] sm:$0xff]   ;;  %v5640_v4 = vld [vmem:[#allocation8 + $0x60] sm:$0xff]  }
 0x228   :  { %3857 = vmatprep.subr.bf16.mxu1 %v5585_v7 }
 0x22a   :  { %3817 = vmatpush1.bf16.msra.mxu0 %v5580_v10  ;;  %v5651_v10 = vld [vmem:[#allocation8 + $0xb8] sm:$0xff]  }
 0x22b   :  { %3858 = vmatpush1.bf16.msra.mxu1 %v5583_v11  ;;  %3818 = vmatprep.subr.bf16.mxu0 %v5588_v33  ;;  %v5652_v11 = vld [vmem:[#allocation8 + $0xf0] sm:$0xff]   ;;  %v5641_v33 = vld [vmem:[#allocation8 + $0x20] sm:$0xff]  }
 0x22c   :  { %3859 = vmatprep.subr.bf16.mxu1 %v5591_v12  ;;  %v5653_v12 = vld [vmem:[#allocation8 + $0xb0] sm:$0xff]  }
 0x22e   :  { %3819 = vmatpush2.bf16.msra.mxu0 %v5586_v37  ;;  %v5642_v37 = vld [vmem:[#allocation8 + $0x58] sm:$0xff]  }
 0x22f   :  { %3860 = vmatpush2.bf16.msra.mxu1 %v5589_v40  ;;  %3820 = vmatprep.subr.bf16.mxu0 %v5594_v13  ;;  %v5654_v40 = vld [vmem:[#allocation8 + $0xe8] sm:$0xff]   ;;  %v5643_v13 = vld [vmem:[#allocation8 + $0x18] sm:$0xff]  }
 0x230   :  { %3861 = vmatprep.subr.bf16.mxu1 %v5597_v14  ;;  %v5655_v14 = vld [vmem:[#allocation8 + $0xa8] sm:$0xff]  }
 0x232   :  { %3821 = vmatpush2.bf16.msra.mxu0 %v5592_v15  ;;  %v5644_v15 = vld [vmem:[#allocation8 + $0x50] sm:$0xff]  }
 0x233   :  { %3862 = vmatpush2.bf16.msra.mxu1 %v5595_v16  ;;  %3822 = vmatprep.subr.bf16.mxu0 %v5600_v17  ;;  %v5656_v16 = vld [vmem:[#allocation8 + $0xe0] sm:$0xff]   ;;  %v5645_v17 = vld [vmem:[#allocation8 + $0x10] sm:$0xff]  }
 0x234   :  { %3863 = vmatprep.subr.bf16.mxu1 %v5603_v18  ;;  %v5657_v18 = vld [vmem:[#allocation8 + $0xa0] sm:$0xff]  }
 0x236   :  { %3823 = vmatpush2.bf16.msra.mxu0 %v5598_v19  ;;  %v5646_v19 = vld [vmem:[#allocation8 + $0x48] sm:$0xff]  }
 0x237   :  { %3864 = vmatpush2.bf16.msra.mxu1 %v5601_v22  ;;  %3824 = vmatprep.subr.bf16.mxu0 %v5606_v23  ;;  %v5658_v22 = vld [vmem:[#allocation8 + $0xd8] sm:$0xff]   ;;  %v5647_v23 = vld [vmem:[#allocation8 + $0x8] sm:$0xff]  }
 0x238   :  { %3865 = vmatprep.subr.bf16.mxu1 %v5609_v24  ;;  %v5659_v24 = vld [vmem:[#allocation8 + $0x98] sm:$0xff]  }
 0x23a   :  { %3825 = vmatpush2.bf16.msra.mxu0 %v5604_v27  ;;  %v5648_v27 = vld [vmem:[#allocation8 + $0x40] sm:$0xff]  }
 0x23b   :  { %3866 = vmatpush2.bf16.msra.mxu1 %v5607_v20  ;;  %3826 = vmatprep.subr.bf16.mxu0 %v5612_v21  ;;  %v5649_v20 = vld [vmem:[#allocation8] sm:$0xff]   ;;  %v3884_v21 = vmax.f32 %v5952_v46, 0.0 }
 0x23c   :  { %3867 = vmatprep.subr.bf16.mxu1 %v5615_v28 }
 0x23d   :  { %v3888_v28 = vpack.c.bf16 %v3884_v21, %v3884_v21  ;;  %v4247_v21 = vstv %s5976_s6 }
 0x23e   :  { %3827 = vmatpush2.bf16.msra.mxu0 %v5610_v30  ;;  %v5660_v30 = vld [vmem:[#allocation8 + $0xd0] sm:$0xff]  }
 0x23f   :  { %3868 = vmatpush2.bf16.msra.mxu1 %v5613_v31  ;;  %3828 = vmatprep.subr.bf16.mxu0 %v5618_v34  ;;  %v5661_v31 = vld [vmem:[#allocation8 + $0x90] sm:$0xff]  }
 0x240   :  { %3869 = vmatprep.subr.bf16.mxu1 %v5621_v35 }
 0x242   :  { %3829 = vmatpush2.bf16.msra.mxu0 %v5616_v36 }
 0x243   :  { %3870 = vmatpush2.bf16.msra.mxu1 %v5619_v26  ;;  %3830 = vmatprep.subr.bf16.mxu0 %v5624_v29 }
 0x244   :  { %3871 = vmatprep.subr.bf16.mxu1 %v5627_v32  ;;  %v5662_v32 = vld [vmem:[#allocation8 + $0xc8] sm:$0xff]  }
 0x246   :  { %3831 = vmatpush2.bf16.msra.mxu0 %v5622_v39 }
 0x247   :  { %3872 = vmatpush2.bf16.msra.mxu1 %v5625_v41  ;;  %3832 = vmatprep.subr.bf16.mxu0 %v5630_v44  ;;  %v5663_v41 = vld [vmem:[#allocation8 + $0x88] sm:$0xff]  }
 0x248   :  { %3873 = vmatprep.subr.bf16.mxu1 %v5633_v45 }
 0x24a   :  { %3833 = vmatpush2.bf16.msra.mxu0 %v5628_v43 }
 0x24b   :  { %3874 = vmatpush2.bf16.msra.mxu1 %v5631_v25  ;;  %4812 = vmatprep.subr.bf16.mxu0 %v5634_v51  ;;  %v5664_v25 = vld [vmem:[#allocation8 + $0xc0] sm:$0xff]  }
 0x24d   :  { %v3590_v48 = vpop.f32.mrf.mxu0  ;;  %3835 = vmatmul.mubr.bf16.vlgmr.msra.gmra.mxu0 %v5913_v5 }
 0x24e   :  { %v3631_v50 = vpop.f32.mrf.mxu1  ;;  %3876 = vmatmul.mubr.bf16.vlgmr.msra.gmra.mxu1 %v5915_v6  ;;  %v3591_v59 = vadd.f32 %v3590_v48, %v659_v54  ;;  %4813 = vmatpush3.bf16.msra.mxu0 %v5635_v55  ;;  %v5650_v6 = vld [vmem:[#allocation8 + $0xf8] sm:$0xff]  }
 0x24f   :  { %4187 = vmatprep.mubr.bf16.mxu0 %v3889_v52  ;;  %v3592_v57 = vpop.f32.mrf.mxu0  ;;  %4814 = vmatprep.subr.bf16.mxu0 %v5636_v56 }
 0x250   :  { %v3633_v61 = vpop.f32.mrf.mxu1  ;;  %v3632_v63 = vadd.f32 %v3631_v50, %v3591_v59  ;;  %v3593_v1 = vadd.f32 %v3592_v57, %v663_v58  ;;  %4834 = vmatprep.subr.bf16.mxu1 %v5650_v6 }
 0x251   :  { %v3594_v2 = vpop.f32.mrf.mxu0  ;;  %4835 = vmatpush3.bf16.msra.mxu1 %v5651_v10 }
 0x252   :  { %v3635_v3 = vpop.f32.mrf.mxu1  ;;  %v3634_v8 = vadd.f32 %v3633_v61, %v3593_v1  ;;  %4815 = vmatpush3.bf16.msra.mxu0 %v5637_v60  ;;  %4836 = vmatprep.subr.bf16.mxu1 %v5652_v11 }
 0x253   :  { %v3595_v7 = vpop.f32.mrf.mxu0  ;;  %4816 = vmatprep.subr.bf16.mxu0 %v5638_v62 }
 0x254   :  { %v3636_v5 = vpop.f32.mrf.mxu1 }
 0x255   :  { %4837 = vmatpush3.bf16.msra.mxu1 %v5653_v12 }
 0x256   :  { %4817 = vmatpush3.bf16.msra.mxu0 %v5639_v9  ;;  %4838 = vmatprep.subr.bf16.mxu1 %v5654_v40 }
 0x257   :  { %4818 = vmatprep.subr.bf16.mxu0 %v5640_v4 }
 0x259   :  { %4839 = vmatpush3.bf16.msra.mxu1 %v5655_v14  ;;  %v4777_v14 = vld [vmem:[#allocation10] ss:$0 sm:$0xff] }
 0x25a   :  { %4819 = vmatpush3.bf16.msra.mxu0 %v5641_v33  ;;  %4840 = vmatprep.subr.bf16.mxu1 %v5656_v16 }
 0x25b   :  { %4820 = vmatprep.subr.bf16.mxu0 %v5642_v37 }
 0x25d   :  { %4841 = vmatpush3.bf16.msra.mxu1 %v5657_v18 }
 0x25e   :  { %4821 = vmatpush3.bf16.msra.mxu0 %v5643_v13  ;;  %4842 = vmatprep.subr.bf16.mxu1 %v5658_v22 }
 0x25f   :  { %4822 = vmatprep.subr.bf16.mxu0 %v5644_v15 }
 0x261   :  { %4843 = vmatpush3.bf16.msra.mxu1 %v5659_v24  ;;  %v4810_v24 = vld [vmem:[#allocation11] ss:$0 sm:$0xff] }
 0x262   :  { %4823 = vmatpush3.bf16.msra.mxu0 %v5645_v17  ;;  %4844 = vmatprep.subr.bf16.mxu1 %v5660_v30 }
 0x263   :  { %4824 = vmatprep.subr.bf16.mxu0 %v5646_v19 }
 0x265   :  { %4845 = vmatpush3.bf16.msra.mxu1 %v5661_v31 }
 0x266   :  { %4825 = vmatpush3.bf16.msra.mxu0 %v5647_v23  ;;  %4846 = vmatprep.subr.bf16.mxu1 %v5662_v32 }
 0x267   :  { %4826 = vmatprep.subr.bf16.mxu0 %v5648_v27 }
 0x269   :  { %4847 = vmatpush3.bf16.msra.mxu1 %v5663_v41 }
 0x26a   :  { %4827 = vmatpush3.bf16.msra.mxu0 %v5649_v20  ;;  %4848 = vmatprep.subr.bf16.mxu1 %v5664_v25 }
 0x26d   :  { %4188 = vmatmul.mubr.bf16.vlgmr.msra.gmra.mxu0 %v3888_v28  ;;  %4849 = vmatpush3.bf16.msra.mxu1 %v5665_v47 }
 0x28d   :  { %v3672_v34 = vpop.f32.mrf.mxu0 }
 0x28e   :  { %v3713_v35 = vpop.f32.mrf.mxu1  ;;  %v3673_v36 = vadd.f32 %v3672_v34, %v3632_v63 }
 0x28f   :  { %v3674_v26 = vpop.f32.mrf.mxu0 }
 0x290   :  { %v3715_v29 = vpop.f32.mrf.mxu1  ;;  %v3714_v38 = vadd.f32 %v3713_v35, %v3673_v36  ;;  %v3675_v39 = vadd.f32 %v3674_v26, %v3634_v8 }
 0x291   :  { %v3676_v44 = vpop.f32.mrf.mxu0 }
 0x292   :  { %v3717_v45 = vpop.f32.mrf.mxu1  ;;  %v3716_v46 = vadd.f32 %v3715_v29, %v3675_v39 }
 0x293   :  { %v3677_v42 = vpop.f32.mrf.mxu0 }
 0x294   :  { %v3718_v43 = vpop.f32.mrf.mxu1 }
 0x2cd   :  { %v3754_v51 = vpop.f32.mrf.mxu0 }
 0x2ce   :  { %v3795_v0 = vpop.f32.mrf.mxu1  ;;  %v3755_v49 = vadd.f32 %v3754_v51, %v3714_v38 }
 0x2cf   :  { %v3756_v53 = vpop.f32.mrf.mxu0 }
 0x2d0   :  { %v3797_v54 = vpop.f32.mrf.mxu1  ;;  %v3796_v55 = vadd.f32 %v3795_v0, %v3755_v49  ;;  %v3757_v50 = vadd.f32 %v3756_v53, %v3716_v46 }
 0x2d1   :  { %v3758_v56 = vpop.f32.mrf.mxu0 }
 0x2d2   :  { %v3799_v52 = vpop.f32.mrf.mxu1  ;;  %v3798_v57 = vadd.f32 %v3797_v54, %v3757_v50 }
 0x2d3   :  { %v3759_v58 = vpop.f32.mrf.mxu0 }
 0x2d4   :  { %v3800_v48 = vpop.f32.mrf.mxu1 }
 0x30d   :  { %v3836_v59 = vpop.f32.mrf.mxu0 }
 0x30e   :  { %v3877_v60 = vpop.f32.mrf.mxu1  ;;  %v3837_v61 = vadd.f32 %v3836_v59, %v3796_v55 }
 0x30f   :  { %v3838_v62 = vpop.f32.mrf.mxu0 }
 0x310   :  { %v3879_v63 = vpop.f32.mrf.mxu1  ;;  %v3878_v1 = vadd.f32 %v3877_v60, %v3837_v61  ;;  %v3839_v2 = vadd.f32 %v3838_v62, %v3798_v57 }
 0x311   :  { %v3840_v3 = vpop.f32.mrf.mxu0 }
 0x312   :  { %v3881_v8 = vpop.f32.mrf.mxu1  ;;  %v3880_v9 = vadd.f32 %v3879_v63, %v3839_v2  ;;  %v3886_v4 = vmax.f32 %v3878_v1, 0.0 }
 0x313   :  { %v3841_v7 = vpop.f32.mrf.mxu0 }
 0x314   :  { %v3882_v5 = vpop.f32.mrf.mxu1  ;;  %v3887_v6 = vmax.f32 %v3880_v9, 0.0  ;;  %v3890_v11 = vpack.c.bf16 %v3886_v4, %v3886_v4 }
 0x316   :  { %v3891_v10 = vpack.c.bf16 %v3887_v6, %v3887_v6 }
 0x318   :  { %4227 = vmatprep.mubr.bf16.mxu1 %v3891_v10 }
 0x319   :  { %4228 = vmatmul.mubr.bf16.vlgmr.msra.gmra.mxu1 %v3890_v11 }
 0x32d   :  { %v4828_v33 = vpop.f32.mrf.mxu0 }
 0x32f   :  { %v4829_v12 = vpop.f32.mrf.mxu0 }
 0x330   :  { %v4830_v37 = vadd.f32 %v4829_v12, %v4828_v33 }
 0x331   :  { %v4831_v40 = vpop.f32.mrf.mxu0 }
 0x332   :  { %v4190_v17 = vadd.f32 %v4830_v37, %v4777_v14 }
 0x333   :  { %v4832_v13 = vpop.f32.mrf.mxu0 }
 0x3d9   :  { %v4850_v15 = vpop.f32.mrf.mxu1 }
 0x3db   :  { %v4851_v16 = vpop.f32.mrf.mxu1 }
 0x3dc   :  { %v4852_v18 = vadd.f32 %v4851_v16, %v4850_v15 }
 0x3dd   :  { %v4853_v19 = vpop.f32.mrf.mxu1 }
 0x3de   :  { %v4230_v22 = vadd.f32 %v4852_v18, %v4190_v17 }
 0x3df   :  { %v4854_v23 = vpop.f32.mrf.mxu1 }
 0x3e0   :  { %v4235_v27 = vmax.f32 %v4230_v22, 0.0 }
 0x3e2   :  { %v4243_v20 = vmul.f32 %v4810_v24, %v4235_v27 }
 0x3e4   :  { %4244 = vadd.xlane.f32.xlu0 %v4243_v20 }
 0x46d   :  { %v4245_v28 = vpop.xlane.xlu0 %4244 }
 0x46e   :  { %v4248_v30 = vadd.f32 %v4247_v21, %v4245_v28 }
 0x470   :  { %v4811_v31 = vmul.f32 -1.442695, %v4248_v30 }
 0x472   :  { %5666 = vpow2.f32 %v4811_v31 }
 0x47f   :  { %v5667_v34 = vpop.eup %5666 }
 0x480   :  { %v4252_v35 = vadd.f32 1.0, %v5667_v34 }
 0x482   :  { %5668 = vrcp.f32 %v4252_v35 }
 0x48f   :  { %v5669_v36 = vpop.eup %5668 }
 0x490   :  { %4256 = vst.msk [vmem:[%s5977_s7] sm:$0xff] %vm4255_vm0, %v5669_v36 }
 0x491   :  { %4261 = vsyncpa [#allocation4], 1 }
 0x492   :  { %4262 = vsyncpa [#allocation6], 1 }
 0x493   :  { %4263 = vsyncpa [#allocation9], 1 }
 0x494   :  { %4264 = vsyncpa [#allocation12], 1 }

</bundles_post_ra>
